<compile_context>
chip_gen: v7x
topology: tpu7x:2x2x1
jax: 0.10.0
libtpu: 0.0.40
codegen_flags: <defaults>
</compile_context>

<pallas_src>
import jax
import jax.numpy as jnp
import numpy as np
from jax import lax
from jax.experimental import pallas as pl
from jax.experimental.pallas import tpu as pltpu

# Model constants implied by HiddenNet2.
C_IN, KH, KW = 3, 5, 5
C_OUT = 64
OH, OW = 16, 16
P = OH * OW                  # 256 spatial positions
K_RAW = C_IN * KH * KW       # 75
K_PAD = 128                  # padded contraction dim (lane / sublane aligned)
F = C_OUT * P                # 16384 FC input features
NUM_CLASSES = 10


# ----------------------------- Pallas kernels ------------------------------ #

def conv_relu_kernel(p_ref, w_ref, b_ref, o_ref):
    # p_ref: (1, K_PAD, P) one image's patches (K-major), w_ref: (C_OUT, K_PAD),
    # b_ref: (C_OUT, 1), o_ref: (1, C_OUT, P).
    acc = jnp.dot(w_ref[...], p_ref[0], preferred_element_type=jnp.float32)  # (64, 256)
    o_ref[0] = jnp.maximum(acc + b_ref[...], 0.0).astype(o_ref.dtype)


def fc_kernel(h_ref, w_ref, b_ref, o_ref):
    # h_ref: (b_blk, F), w_ref: (N, F) lane-dense, b_ref: (1, N), o_ref: (b_blk, N).
    logits = lax.dot_general(
        h_ref[...], w_ref[...],
        dimension_numbers=(((1,), (1,)), ((), ())),   # A @ B^T, both operands lane-dense
        preferred_element_type=jnp.float32)
    o_ref[...] = (logits + b_ref[...]).astype(o_ref.dtype)


# ------------------------------ Wrappers ----------------------------------- #

def conv_relu_pallas(patches, wc_pad, bc_col):
    # patches: (B, K_PAD, P), wc_pad: (C_OUT, K_PAD), bc_col: (C_OUT, 1) -> (B, C_OUT, P)
    B = patches.shape[0]
    return pl.pallas_call(
        conv_relu_kernel,
        out_shape=jax.ShapeDtypeStruct((B, C_OUT, P), jnp.float32),
        grid=(B,),
        in_specs=[
            pl.BlockSpec((1, K_PAD, P), lambda b: (b, 0, 0)),
            pl.BlockSpec((C_OUT, K_PAD), lambda b: (0, 0)),
            pl.BlockSpec((C_OUT, 1), lambda b: (0, 0)),
        ],
        out_specs=pl.BlockSpec((1, C_OUT, P), lambda b: (b, 0, 0)),
        compiler_params=pltpu.CompilerParams(
            dimension_semantics=("parallel",)),
    )(patches, wc_pad, bc_col)


def _pick_batch_block(B, cap=64):
    # Keep per-step FC VMEM under the default scoped limit on every generation
    # (cap=64 rows -> ~10 MiB/step double-buffered). Block must be a multiple of 8
    # or equal to the full batch.
    if B <= cap:
        return B
    for cand in (cap, 32, 16, 8):
        if B % cand == 0:
            return cand
    return B


def fc_pallas(h, wf, bf_row):
    # h: (B, F), wf: (N, F) (PyTorch fc1.weight as-is), bf_row: (1, N) -> (B, N)
    B = h.shape[0]
    N = wf.shape[0]
    b_blk = _pick_batch_block(B)
    return pl.pallas_call(
        fc_kernel,
        out_shape=jax.ShapeDtypeStruct((B, N), jnp.float32),
        grid=(B // b_blk,),
        in_specs=[
            pl.BlockSpec((b_blk, F), lambda i: (i, 0)),
            pl.BlockSpec((N, F), lambda i: (0, 0)),
            pl.BlockSpec((1, N), lambda i: (0, 0)),
        ],
        out_specs=pl.BlockSpec((b_blk, N), lambda i: (i, 0)),
        compiler_params=pltpu.CompilerParams(
            dimension_semantics=("parallel",)),
    )(h, wf, bf_row)


# ---------------------- One-time parameter preparation ---------------------- #

def prepare_params(Wc, bc, Wf, bf):
    """Hoisted weight prep (done once, outside the forward pass)."""
    # Conv weight flattened in (c_in, kh, kw) order, zero-padded K: 75 -> 128.
    wc_pad = jnp.pad(Wc.reshape(C_OUT, K_RAW), ((0, 0), (0, K_PAD - K_RAW)))
    bc_col = bc.reshape(C_OUT, 1)
    # fc1.weight is (10, 16384) flattened in (c,h,w) order — exactly the order our
    # (B, 64, 256) conv output flattens to, so it is used as-is (lane-dense).
    wf = Wf
    bf_row = bf.reshape(1, -1)
    return wc_pad, bc_col, wf, bf_row


# --------------------------- HiddenNet2 forward ----------------------------- #

@jax.jit
def hiddennet2_forward(x, wc_pad, bc_col, wf, bf_row):
    """x: (B,3,32,32) float32 -> logits (B,10)."""
    B = x.shape[0]
    # Patch extraction: (B, 75, 16, 16) with the 75 features ordered (c, kh, kw).
    patches = lax.conv_general_dilated_patches(
        x, filter_shape=(KH, KW), window_strides=(2, 2),
        padding=((2, 2), (2, 2)), precision=lax.Precision.HIGHEST)
    patches = patches.reshape(B, K_RAW, P)                       # free metadata reshape
    patches = jnp.pad(patches, ((0, 0), (0, K_PAD - K_RAW), (0, 0)))  # K: 75 -> 128

    hT = conv_relu_pallas(patches, wc_pad, bc_col)               # (B, 64, 256)
    h = hT.reshape(B, F)                                         # free; (c,h,w) order

    return fc_pallas(h, wf, bf_row)                              # (B, 10)


def reference_forward(x, params):
    """Pure-JAX NCHW reference mirroring the PyTorch module exactly."""
    Wc, bc, Wf, bf = params
    y = lax.conv_general_dilated(
        x, Wc, window_strides=(2, 2), padding=((2, 2), (2, 2)),
        dimension_numbers=("NCHW", "OIHW", "NCHW"),
        precision=lax.Precision.HIGHEST)
    y = jnp.maximum(y + bc[None, :, None, None], 0.0)            # (B,64,16,16)
    y = y.reshape(x.shape[0], -1)                                # (c,h,w) flatten
    return jnp.dot(y, Wf.T, precision=lax.Precision.HIGHEST) + bf


# --------------------------------- Main ------------------------------------- #

if __name__ == "__main__":
    key = jax.random.PRNGKey(0)
    k1, k2, k3, k4, k5 = jax.random.split(key, 5)

    # Deterministic synthetic parameters (shapes from HiddenNet2.__init__).
    Wc = jax.random.normal(k1, (C_OUT, C_IN, KH, KW), jnp.float32) * 0.05   # conv1.weight
    bc = jax.random.normal(k2, (C_OUT,), jnp.float32) * 0.05                # conv1.bias
    Wf = jax.random.normal(k3, (NUM_CLASSES, F), jnp.float32) * 0.01        # fc1.weight
    bf = jax.random.normal(k4, (NUM_CLASSES,), jnp.float32) * 0.01          # fc1.bias

    # Small batch; spatial must be 32 so fc1 sees 16*16*64 features.
    x = jax.random.normal(k5, (2, C_IN, 32, 32), jnp.float32)

    prepped = prepare_params(Wc, bc, Wf, bf)                     # one-time weight prep
    out = jax.block_until_ready(hiddennet2_forward(x, *prepped))
    ref = jax.block_until_ready(reference_forward(x, (Wc, bc, Wf, bf)))

    np.testing.assert_allclose(np.asarray(out), np.asarray(ref),
                               rtol=5e-4, atol=5e-4)
    print("KERNEL_OK")
</pallas_src>

<mosaic_0001>
module attributes {stable_mosaic.version = 11 : i64} {
  func.func @conv_relu_kernel(%arg0: i32, %arg1: memref<1x128x256xf32, #tpu.memory_space<vmem>>, %arg2: memref<64x128xf32, #tpu.memory_space<vmem>>, %arg3: memref<64x1xf32, #tpu.memory_space<vmem>>, %arg4: memref<1x64x256xf32, #tpu.memory_space<vmem>>) attributes {dimension_semantics = [#tpu.dimension_semantics<parallel>], iteration_bounds = array<i64: 2>, scalar_prefetch = 0 : i64, scratch_operands = 0 : i64, tpu.core_type = #tpu.core_type<tc>, window_params = [{transform_indices = @transform_0, window_bounds = array<i64: 1, 128, 256>}, {pipeline_mode = #tpu.pipeline_mode<synchronous>, transform_indices = @transform_1, window_bounds = array<i64: 64, 128>}, {pipeline_mode = #tpu.pipeline_mode<synchronous>, transform_indices = @transform_2, window_bounds = array<i64: 64, 1>}, {transform_indices = @transform_3, window_bounds = array<i64: 1, 64, 256>}]} {
    %c0 = arith.constant 0 : index
    %c0_0 = arith.constant 0 : index
    %0 = vector.load %arg2[%c0, %c0_0] : memref<64x128xf32, #tpu.memory_space<vmem>>, vector<64x128xf32>
    %c0_1 = arith.constant 0 : index
    %c0_2 = arith.constant 0 : index
    %c0_3 = arith.constant 0 : index
    %1 = vector.load %arg1[%c0_1, %c0_2, %c0_3] : memref<1x128x256xf32, #tpu.memory_space<vmem>>, vector<1x128x256xf32>
    %2 = vector.shape_cast %1 : vector<1x128x256xf32> to vector<128x256xf32>
    %cst = arith.constant dense<0.000000e+00> : vector<64x256xf32>
    %3 = tpu.matmul %0, %2, %cst {dimension_numbers = #tpu.dot_dimension_numbers<[1], [0], [0], [1], [0, 0, 1, 1], [], []>} : vector<64x128xf32>, vector<128x256xf32>, vector<64x256xf32> -> vector<64x256xf32>
    %c0_4 = arith.constant 0 : index
    %c0_5 = arith.constant 0 : index
    %4 = vector.load %arg3[%c0_4, %c0_5] : memref<64x1xf32, #tpu.memory_space<vmem>>, vector<64x1xf32>
    %5 = vector.broadcast %4 : vector<64x1xf32> to vector<64x256xf32>
    %6 = arith.addf %3, %5 : vector<64x256xf32>
    %cst_6 = arith.constant 0.000000e+00 : f32
    %7 = vector.broadcast %cst_6 : f32 to vector<64x256xf32>
    %8 = arith.maximumf %6, %7 : vector<64x256xf32>
    %c0_7 = arith.constant 0 : index
    %c0_8 = arith.constant 0 : index
    %c0_9 = arith.constant 0 : index
    %9 = vector.load %arg4[%c0_7, %c0_8, %c0_9] : memref<1x64x256xf32, #tpu.memory_space<vmem>>, vector<1x64x256xf32>
    %10 = vector.shape_cast %9 : vector<1x64x256xf32> to vector<64x256xf32>
    %11 = vector.shape_cast %8 : vector<64x256xf32> to vector<1x64x256xf32>
    tpu.vector_store %arg4[%c0_7, %c0_8, %c0_9], %11 {strides = array<i32>} : memref<1x64x256xf32, #tpu.memory_space<vmem>>, vector<1x64x256xf32>,
    return
  }
  func.func @transform_0(%arg0: i32) -> (i32, i32, i32) {
    %c0_i32 = arith.constant 0 : i32
    %c0_i32_0 = arith.constant 0 : i32
    %c0_i32_1 = arith.constant 0 : i32
    return %arg0, %c0_i32, %c0_i32_0 : i32, i32, i32
  }
  func.func @transform_1(%arg0: i32) -> (i32, i32) {
    %c0_i32 = arith.constant 0 : i32
    %c0_i32_0 = arith.constant 0 : i32
    %c0_i32_1 = arith.constant 0 : i32
    return %c0_i32, %c0_i32_0 : i32, i32
  }
  func.func @transform_2(%arg0: i32) -> (i32, i32) {
    %c0_i32 = arith.constant 0 : i32
    %c0_i32_0 = arith.constant 0 : i32
    %c0_i32_1 = arith.constant 0 : i32
    return %c0_i32, %c0_i32_0 : i32, i32
  }
  func.func @transform_3(%arg0: i32) -> (i32, i32, i32) {
    %c0_i32 = arith.constant 0 : i32
    %c0_i32_0 = arith.constant 0 : i32
    %c0_i32_1 = arith.constant 0 : i32
    return %arg0, %c0_i32, %c0_i32_0 : i32, i32, i32
  }
}

module attributes {stable_mosaic.version = 11 : i64} {
  func.func @fc_kernel(%arg0: i32, %arg1: memref<2x16384xf32, #tpu.memory_space<vmem>>, %arg2: memref<10x16384xf32, #tpu.memory_space<vmem>>, %arg3: memref<1x10xf32, #tpu.memory_space<vmem>>, %arg4: memref<2x10xf32, #tpu.memory_space<vmem>>) attributes {dimension_semantics = [#tpu.dimension_semantics<parallel>], iteration_bounds = array<i64: 1>, scalar_prefetch = 0 : i64, scratch_operands = 0 : i64, tpu.core_type = #tpu.core_type<tc>, window_params = [{transform_indices = @transform_0, window_bounds = array<i64: 2, 16384>}, {pipeline_mode = #tpu.pipeline_mode<synchronous>, transform_indices = @transform_1, window_bounds = array<i64: 10, 16384>}, {pipeline_mode = #tpu.pipeline_mode<synchronous>, transform_indices = @transform_2, window_bounds = array<i64: 1, 10>}, {transform_indices = @transform_3, window_bounds = array<i64: 2, 10>}]} {
    %c0 = arith.constant 0 : index
    %c0_0 = arith.constant 0 : index
    %0 = vector.load %arg1[%c0, %c0_0] : memref<2x16384xf32, #tpu.memory_space<vmem>>, vector<2x16384xf32>
    %c0_1 = arith.constant 0 : index
    %c0_2 = arith.constant 0 : index
    %1 = vector.load %arg2[%c0_1, %c0_2] : memref<10x16384xf32, #tpu.memory_space<vmem>>, vector<10x16384xf32>
    %cst = arith.constant dense<0.000000e+00> : vector<2x10xf32>
    %2 = tpu.matmul %0, %1, %cst {dimension_numbers = #tpu.dot_dimension_numbers<[1], [1], [0], [0], [0, 0, 1, 0], [], []>} : vector<2x16384xf32>, vector<10x16384xf32>, vector<2x10xf32> -> vector<2x10xf32>
    %c0_3 = arith.constant 0 : index
    %c0_4 = arith.constant 0 : index
    %3 = vector.load %arg3[%c0_3, %c0_4] : memref<1x10xf32, #tpu.memory_space<vmem>>, vector<1x10xf32>
    %4 = vector.broadcast %3 : vector<1x10xf32> to vector<2x10xf32>
    %5 = arith.addf %2, %4 : vector<2x10xf32>
    %c0_5 = arith.constant 0 : index
    %c0_6 = arith.constant 0 : index
    %6 = vector.load %arg4[%c0_5, %c0_6] : memref<2x10xf32, #tpu.memory_space<vmem>>, vector<2x10xf32>
    tpu.vector_store %arg4[%c0_5, %c0_6], %5 {strides = array<i32>} : memref<2x10xf32, #tpu.memory_space<vmem>>, vector<2x10xf32>,
    return
  }
  func.func @transform_0(%arg0: i32) -> (i32, i32) {
    %c0_i32 = arith.constant 0 : i32
    %c0_i32_0 = arith.constant 0 : i32
    return %arg0, %c0_i32 : i32, i32
  }
  func.func @transform_1(%arg0: i32) -> (i32, i32) {
    %c0_i32 = arith.constant 0 : i32
    %c0_i32_0 = arith.constant 0 : i32
    %c0_i32_1 = arith.constant 0 : i32
    return %c0_i32, %c0_i32_0 : i32, i32
  }
  func.func @transform_2(%arg0: i32) -> (i32, i32) {
    %c0_i32 = arith.constant 0 : i32
    %c0_i32_0 = arith.constant 0 : i32
    %c0_i32_1 = arith.constant 0 : i32
    return %c0_i32, %c0_i32_0 : i32, i32
  }
  func.func @transform_3(%arg0: i32) -> (i32, i32) {
    %c0_i32 = arith.constant 0 : i32
    %c0_i32_0 = arith.constant 0 : i32
    return %arg0, %c0_i32 : i32, i32
  }
}

</mosaic_0001>

<bundles_post_ra>
// kernel: hiddennet2_forward.2
= control target key start
LH: loop header
LB: loop body
LE: loop exit
PB: predicated region body
PF: predicated region fallthrough
CT: control target
= control target key end

     0   :  { %s562_s12 = smov 0   ;;  %s691_s0 = inlined_call_operand.vmem [shape: f32[2,128,256], index: 0, kind: input, shape index: {}]   ;;  %s692_s1 = inlined_call_operand.vmem [shape: f32[64,128], index: 1, kind: input, shape index: {}]   ;;  %s693_s2 = inlined_call_operand.vmem [shape: f32[64,1], index: 2, kind: input, shape index: {}]   ;;  %s694_s3 = inlined_call_operand.vmem [shape: f32[2,64,256], index: 3, kind: output, shape index: {}]  }
   0x1 LB: > { %s459_s13 = sadd.s32 4294967295, %s538_s12   ;;  %p463_p0 = scmp.ge.s32.totalorder %s538_s12, 1  ;;  %s538_s12 = sphi %s562_s12, %s13_s12  }
   0x2   : > { %p137_p1 = scmp.lt.s32.totalorder %s538_s12, 3 }
   0x4   : > { %p138_p2 = pnand %p463_p0, %p137_p1 }
   0x5   : > { %p161_p3 = scmp.lt.s32.totalorder (!%p138_p2), %s459_s13, 1  ;;  %v540_v0 = vmov (!%p138_p2), 0.0   ;;  %v541_v1 = vmov (!%p138_p2), 0   ;;  %v213_v2 = vld [vmem:[%s693_s2 + $0x10] sm:$0xff] (!%p138_p2)  ;;  %v211_v3 = vld [vmem:[%s693_s2] sm:$0xff] (!%p138_p2)  ;;  %v214_v4 = vld [vmem:[%s693_s2 + $0x18] sm:$0xff] (!%p138_p2) }
   0x6   : > { %141 = sbr.rel (%p138_p2) target bundleno = 281 (0x119), region = 32  ;;  %323 = vmatprep.mubr.f32.mxu0 (!%p138_p2), %v540_v0  ;;  %347 = vmatprep.mubr.f32.mxu1 (!%p138_p2), %v540_v0  ;;  %v212_v5 = vld [vmem:[%s693_s2 + $0x8] sm:$0xff] (!%p138_p2)  ;;  %v215_v20 = vld [vmem:[%s693_s2 + $0x20] sm:$0xff] (!%p138_p2)  ;;  %v218_v27 = vld [vmem:[%s693_s2 + $0x38] sm:$0xff] (!%p138_p2) }
   0x7   : > { %531 = vset.pattern.permute.xlu1 (!%p138_p2), %v541_v1  ;;  %530 = vset.pattern.permute.xlu0 (!%p138_p2), %v541_v1  ;;  %v216_v19 = vld [vmem:[%s693_s2 + $0x28] sm:$0xff] (!%p138_p2)  ;;  %v217_v28 = vld [vmem:[%s693_s2 + $0x30] sm:$0xff] (!%p138_p2)  ;;  %v171_v58 = vld [vmem:[%s692_s1] sm:$0xff] (!%p138_p2) }
   0x8   : > { %231 = vperm.xlu1 (!%p138_p2), %531, %v213_v2   ;;  %221 = vperm.xlu0 (!%p138_p2), %530, %v211_v3   ;;  %v175_v59 = vld [vmem:[%s692_s1 + $0x20] sm:$0xff] (!%p138_p2)  ;;  %v172_v60 = vld [vmem:[%s692_s1 + $0x8] sm:$0xff] (!%p138_p2)  ;;  %v173_v62 = vld [vmem:[%s692_s1 + $0x10] sm:$0xff] (!%p138_p2) }
   0x9   : > { %v176_v61 = vld [vmem:[%s692_s1 + $0x28] sm:$0xff] (!%p138_p2)  ;;  %v177_v63 = vld [vmem:[%s692_s1 + $0x30] sm:$0xff] (!%p138_p2)  ;;  %v174_v1 = vld [vmem:[%s692_s1 + $0x18] sm:$0xff] (!%p138_p2) }
   0xa   : > { %v178_v2 = vld [vmem:[%s692_s1 + $0x38] sm:$0xff] (!%p138_p2) }
   0xc   : > { %236 = vperm.xlu1 (!%p138_p2), %531, %v214_v4   ;;  %226 = vperm.xlu0 (!%p138_p2), %530, %v212_v5  }
   0xd   : > { %s696_s13 = smov (!%p161_p3, %s459_s13), 1 }
   0xe   : > { %s470_s18 = sshll.u32 %s696_s13, 8  ;;  %s471_s25 = sshll.u32 %s696_s13, 7 }
   0xf   : > { %s587_s23 = scalar_lea.vmem %s691_s0, %s470_s18  ;;  %s670_s28 = scalar_lea.vmem %s694_s3, %s471_s25 }
  0x10   : > { %v180_v6 = vld [vmem:[%s587_s23 + $0x8] sm:$0xff]  ;;  %v182_v7 = vld [vmem:[%s587_s23 + $0x18] sm:$0xff]  ;;  %v179_v8 = vld [vmem:[%s587_s23] sm:$0xff]  ;;  %246 = vperm.xlu1 %531, %v216_v19   ;;  %241 = vperm.xlu0 %530, %v215_v20  }
  0x11   : > { %v472_v9 = vpack.c.bf16 %v182_v7, %v180_v6  ;;  %v181_v10 = vld [vmem:[%s587_s23 + $0x10] sm:$0xff]  ;;  %v184_v11 = vld [vmem:[%s587_s23 + $0x28] sm:$0xff]  ;;  %v186_v12 = vld [vmem:[%s587_s23 + $0x38] sm:$0xff] }
  0x12   : > { %v474_v13 = vpack.c.bf16 %v181_v10, %v179_v8  ;;  %v476_v14 = vpack.c.bf16 %v186_v12, %v184_v11  ;;  %v183_v15 = vld [vmem:[%s587_s23 + $0x20] sm:$0xff]  ;;  %v185_v16 = vld [vmem:[%s587_s23 + $0x30] sm:$0xff]  ;;  %v188_v17 = vld [vmem:[%s587_s23 + $0x48] sm:$0xff] }
  0x13   : > { %473 = vmatprep.subr.bf16.mxu0 %v472_v9  ;;  %504 = vmatprep.subr.bf16.mxu1 %v472_v9  ;;  %v190_v18 = vld [vmem:[%s587_s23 + $0x58] sm:$0xff]  ;;  %v478_v21 = vpack.c.bf16 %v185_v16, %v183_v15  ;;  %v187_v23 = vld [vmem:[%s587_s23 + $0x40] sm:$0xff]  ;;  %v189_v24 = vld [vmem:[%s587_s23 + $0x50] sm:$0xff] }
  0x14   : > { %475 = vmatpush1.bf16.msra.mxu0 %v474_v13  ;;  %512 = vmatpush1.bf16.msra.mxu1 %v474_v13  ;;  %v480_v22 = vpack.c.bf16 %v190_v18, %v188_v17  ;;  %v192_v25 = vld [vmem:[%s587_s23 + $0x68] sm:$0xff]  ;;  %v194_v26 = vld [vmem:[%s587_s23 + $0x78] sm:$0xff]  ;;  %v482_v29 = vpack.c.bf16 %v189_v24, %v187_v23  ;;  %v191_v31 = vld [vmem:[%s587_s23 + $0x60] sm:$0xff] }
  0x15   : > { %477 = vmatprep.subr.bf16.mxu0 %v476_v14  ;;  %505 = vmatprep.subr.bf16.mxu1 %v476_v14  ;;  %v484_v30 = vpack.c.bf16 %v194_v26, %v192_v25  ;;  %v193_v32 = vld [vmem:[%s587_s23 + $0x70] sm:$0xff]  ;;  %v196_v33 = vld [vmem:[%s587_s23 + $0x88] sm:$0xff]  ;;  %v198_v34 = vld [vmem:[%s587_s23 + $0x98] sm:$0xff] }
  0x16   : > { %256 = vperm.xlu1 %531, %v218_v27   ;;  %251 = vperm.xlu0 %530, %v217_v28   ;;  %v486_v35 = vpack.c.bf16 %v193_v32, %v191_v31  ;;  %v488_v36 = vpack.c.bf16 %v198_v34, %v196_v33  ;;  %v195_v37 = vld [vmem:[%s587_s23 + $0x80] sm:$0xff]  ;;  %v197_v38 = vld [vmem:[%s587_s23 + $0x90] sm:$0xff]  ;;  %v200_v39 = vld [vmem:[%s587_s23 + $0xa8] sm:$0xff] }
  0x17   : > { %v202_v40 = vld [vmem:[%s587_s23 + $0xb8] sm:$0xff]  ;;  %v490_v41 = vpack.c.bf16 %v197_v38, %v195_v37  ;;  %v199_v43 = vld [vmem:[%s587_s23 + $0xa0] sm:$0xff]  ;;  %v201_v44 = vld [vmem:[%s587_s23 + $0xb0] sm:$0xff] }
  0x18   : > { %479 = vmatpush1.bf16.msra.mxu0 %v478_v21  ;;  %513 = vmatpush1.bf16.msra.mxu1 %v478_v21  ;;  %v492_v42 = vpack.c.bf16 %v202_v40, %v200_v39  ;;  %v204_v45 = vld [vmem:[%s587_s23 + $0xc8] sm:$0xff]  ;;  %v206_v46 = vld [vmem:[%s587_s23 + $0xd8] sm:$0xff]  ;;  %v494_v47 = vpack.c.bf16 %v201_v44, %v199_v43  ;;  %v203_v49 = vld [vmem:[%s587_s23 + $0xc0] sm:$0xff] }
  0x19   : > { %481 = vmatprep.subr.bf16.mxu0 %v480_v22  ;;  %506 = vmatprep.subr.bf16.mxu1 %v480_v22  ;;  %v496_v48 = vpack.c.bf16 %v206_v46, %v204_v45  ;;  %v205_v50 = vld [vmem:[%s587_s23 + $0xd0] sm:$0xff]  ;;  %v208_v51 = vld [vmem:[%s587_s23 + $0xe8] sm:$0xff]  ;;  %v210_v52 = vld [vmem:[%s587_s23 + $0xf8] sm:$0xff] }
  0x1a   : > { %v498_v53 = vpack.c.bf16 %v205_v50, %v203_v49  ;;  %v500_v54 = vpack.c.bf16 %v210_v52, %v208_v51  ;;  %v207_v55 = vld [vmem:[%s587_s23 + $0xe0] sm:$0xff]  ;;  %v209_v56 = vld [vmem:[%s587_s23 + $0xf0] sm:$0xff] }
  0x1b   : > { %v502_v57 = vpack.c.bf16 %v209_v56, %v207_v55 }
  0x1c   : > { %483 = vmatpush1.bf16.msra.mxu0 %v482_v29  ;;  %514 = vmatpush1.bf16.msra.mxu1 %v482_v29 }
  0x1d   : > { %485 = vmatprep.subr.bf16.mxu0 %v484_v30  ;;  %507 = vmatprep.subr.bf16.mxu1 %v484_v30 }
  0x20   : > { %487 = vmatpush1.bf16.msra.mxu0 %v486_v35  ;;  %515 = vmatpush1.bf16.msra.mxu1 %v486_v35 }
  0x21   : > { %489 = vmatprep.subr.bf16.mxu0 %v488_v36  ;;  %508 = vmatprep.subr.bf16.mxu1 %v488_v36 }
  0x24   : > { %491 = vmatpush1.bf16.msra.mxu0 %v490_v41  ;;  %516 = vmatpush1.bf16.msra.mxu1 %v490_v41 }
  0x25   : > { %493 = vmatprep.subr.bf16.mxu0 %v492_v42  ;;  %509 = vmatprep.subr.bf16.mxu1 %v492_v42 }
  0x28   : > { %495 = vmatpush1.bf16.msra.mxu0 %v494_v47  ;;  %517 = vmatpush1.bf16.msra.mxu1 %v494_v47 }
  0x29   : > { %497 = vmatprep.subr.bf16.mxu0 %v496_v48  ;;  %510 = vmatprep.subr.bf16.mxu1 %v496_v48 }
  0x2c   : > { %499 = vmatpush1.bf16.msra.mxu0 %v498_v53  ;;  %518 = vmatpush1.bf16.msra.mxu1 %v498_v53 }
  0x2d   : > { %501 = vmatprep.subr.bf16.mxu0 %v500_v54  ;;  %511 = vmatprep.subr.bf16.mxu1 %v500_v54 }
  0x30   : > { %503 = vmatpush1.bf16.msra.mxu0 %v502_v57  ;;  %519 = vmatpush1.bf16.msra.mxu1 %v502_v57 }
  0x33   : > { %324 = vmatmul.mubr.f32.vlgmr.msra.gmra.mrb[0].mxu0 %v171_v58  ;;  %348 = vmatmul.mubr.f32.vlgmr.msra.gmra.mrb[0].mxu1 %v175_v59 }
  0x34   : > { %329 = vmatprep.mubr.f32.mxu0 %v540_v0  ;;  %353 = vmatprep.mubr.f32.mxu1 %v540_v0 }
  0x37   : > { %330 = vmatmul.mubr.f32.gmra.mrb[2].mxu0 %v172_v60  ;;  %354 = vmatmul.mubr.f32.gmra.mrb[2].mxu1 %v176_v61 }
  0x38   : > { %335 = vmatprep.mubr.f32.mxu0 %v540_v0  ;;  %359 = vmatprep.mubr.f32.mxu1 %v540_v0 }
  0x3b   : > { %336 = vmatmul.mubr.f32.gmra.mrb[4].mxu0 %v173_v62  ;;  %360 = vmatmul.mubr.f32.gmra.mrb[4].mxu1 %v177_v63 }
  0x3c   : > { %341 = vmatprep.mubr.f32.mxu0 %v540_v0  ;;  %365 = vmatprep.mubr.f32.mxu1 %v540_v0 }
  0x3f   : > { %342 = vmatmul.mubr.f32.gmra.mrb[6].mxu0 %v174_v1  ;;  %366 = vmatmul.mubr.f32.gmra.mrb[6].mxu1 %v178_v2 }
  0x87   : > { %v222_v3 = vpop.permute.xlu0 %221  ;;  %v232_v4 = vpop.permute.xlu1 %231 }
  0x8b   : > { %v227_v5 = vpop.permute.xlu0 %226  ;;  %v237_v6 = vpop.permute.xlu1 %236 }
  0x8f   : > { %v242_v7 = vpop.permute.xlu0 %241  ;;  %v247_v15 = vpop.permute.xlu1 %246 }
  0x95   : > { %v252_v28 = vpop.permute.xlu0 %251  ;;  %v257_v41 = vpop.permute.xlu1 %256 }
 0x106   : > { %v325_v8 = vpop.f32.mrb[0].mxu0  ;;  %v349_v9 = vpop.f32.mrb[0].mxu1 }
 0x107   : > { %v326_v10 = vadd.f32 %v325_v8, %v222_v3  ;;  %v350_v0 = vadd.f32 %v349_v9, %v242_v7  ;;  %v327_v11 = vpop.f32.mrb[1].mxu0  ;;  %v351_v12 = vpop.f32.mrb[1].mxu1 }
 0x108   : > { %v328_v13 = vadd.f32 %v327_v11, %v222_v3  ;;  %v352_v14 = vadd.f32 %v351_v12, %v242_v7 }
 0x109   : > { %v372_v16 = vmax.f32 %v326_v10, 0.0  ;;  %v380_v17 = vmax.f32 %v350_v0, 0.0 }
 0x10a   : > { %v373_v18 = vmax.f32 %v328_v13, 0.0  ;;  %v381_v19 = vmax.f32 %v352_v14, 0.0  ;;  %v331_v20 = vpop.f32.mrb[2].mxu0  ;;  %v355_v21 = vpop.f32.mrb[2].mxu1 }
 0x10b   : > { %388 = vst [vmem:[%s670_s28] sm:$0xff] %v372_v16  ;;  %396 = vst [vmem:[%s670_s28 + $0x40] sm:$0xff] %v380_v17  ;;  %v332_v22 = vadd.f32 %v331_v20, %v227_v5  ;;  %v356_v23 = vadd.f32 %v355_v21, %v247_v15  ;;  %v333_v24 = vpop.f32.mrb[3].mxu0  ;;  %v357_v25 = vpop.f32.mrb[3].mxu1 }
 0x10c   : > { %389 = vst [vmem:[%s670_s28 + $0x8] sm:$0xff] %v373_v18  ;;  %397 = vst [vmem:[%s670_s28 + $0x48] sm:$0xff] %v381_v19  ;;  %v334_v26 = vadd.f32 %v333_v24, %v227_v5  ;;  %v358_v27 = vadd.f32 %v357_v25, %v247_v15 }
 0x10d   : > { %v374_v29 = vmax.f32 %v332_v22, 0.0  ;;  %v382_v30 = vmax.f32 %v356_v23, 0.0 }
 0x10e   : > { %v375_v31 = vmax.f32 %v334_v26, 0.0  ;;  %v383_v32 = vmax.f32 %v358_v27, 0.0  ;;  %v337_v33 = vpop.f32.mrb[4].mxu0  ;;  %v361_v34 = vpop.f32.mrb[4].mxu1 }
 0x10f   : > { %390 = vst [vmem:[%s670_s28 + $0x10] sm:$0xff] %v374_v29  ;;  %398 = vst [vmem:[%s670_s28 + $0x50] sm:$0xff] %v382_v30  ;;  %v338_v35 = vadd.f32 %v337_v33, %v232_v4  ;;  %v362_v36 = vadd.f32 %v361_v34, %v252_v28  ;;  %v339_v37 = vpop.f32.mrb[5].mxu0  ;;  %v363_v38 = vpop.f32.mrb[5].mxu1 }
 0x110   : > { %391 = vst [vmem:[%s670_s28 + $0x18] sm:$0xff] %v375_v31  ;;  %399 = vst [vmem:[%s670_s28 + $0x58] sm:$0xff] %v383_v32  ;;  %v340_v39 = vadd.f32 %v339_v37, %v232_v4  ;;  %v364_v40 = vadd.f32 %v363_v38, %v252_v28 }
 0x111   : > { %v376_v42 = vmax.f32 %v338_v35, 0.0  ;;  %v384_v43 = vmax.f32 %v362_v36, 0.0 }
 0x112   : > { %v377_v44 = vmax.f32 %v340_v39, 0.0  ;;  %v385_v45 = vmax.f32 %v364_v40, 0.0  ;;  %v343_v46 = vpop.f32.mrb[6].mxu0  ;;  %v367_v47 = vpop.f32.mrb[6].mxu1 }
 0x113   : > { %392 = vst [vmem:[%s670_s28 + $0x20] sm:$0xff] %v376_v42  ;;  %400 = vst [vmem:[%s670_s28 + $0x60] sm:$0xff] %v384_v43  ;;  %v344_v48 = vadd.f32 %v343_v46, %v237_v6  ;;  %v368_v49 = vadd.f32 %v367_v47, %v257_v41  ;;  %v345_v50 = vpop.f32.mrb[7].mxu0  ;;  %v369_v51 = vpop.f32.mrb[7].mxu1 }
 0x114   : > { %393 = vst [vmem:[%s670_s28 + $0x28] sm:$0xff] %v377_v44  ;;  %401 = vst [vmem:[%s670_s28 + $0x68] sm:$0xff] %v385_v45  ;;  %v346_v52 = vadd.f32 %v345_v50, %v237_v6  ;;  %v370_v53 = vadd.f32 %v369_v51, %v257_v41 }
 0x115   : > { %v378_v54 = vmax.f32 %v344_v48, 0.0  ;;  %v386_v55 = vmax.f32 %v368_v49, 0.0 }
 0x116   : > { %v379_v56 = vmax.f32 %v346_v52, 0.0  ;;  %v387_v57 = vmax.f32 %v370_v53, 0.0 }
 0x117   : > { %394 = vst [vmem:[%s670_s28 + $0x30] sm:$0xff] %v378_v54  ;;  %402 = vst [vmem:[%s670_s28 + $0x70] sm:$0xff] %v386_v55 }
 0x118   : > { %395 = vst [vmem:[%s670_s28 + $0x38] sm:$0xff] %v379_v56  ;;  %403 = vst [vmem:[%s670_s28 + $0x78] sm:$0xff] %v387_v57 }
 0x119 PF: > { %s13_s12 = sadd.s32 1, %s538_s12  }
 0x11a   : > { %p10_p4 = scmp.ge.s32.totalorder %s13_s12, 4  }
 0x11c   :  { %12 = sbr.rel (!%p10_p4) target bundleno = 1 (0x1), region = 62 }

// kernel: hiddennet2_forward.3
= control target key start
LH: loop header
LB: loop body
LE: loop exit
PB: predicated region body
PF: predicated region fallthrough
CT: control target
= control target key end

     0   :  { %v346_v3 = vlaneseq  ;;  %v5951_v8 = vmov 1983009808   ;;  %s6918_s0 = inlined_call_operand.vmem [shape: f32[2,16384], index: 0, kind: input, shape index: {}]   ;;  %s6919_s1 = inlined_call_operand.vmem [shape: f32[10,16384], index: 1, kind: input, shape index: {}]   ;;  %s6920_s2 = inlined_call_operand.vmem [shape: f32[1,10], index: 2, kind: input, shape index: {}]   ;;  %s6921_s3 = inlined_call_operand.hbm [shape: f32[2,10], index: 3, kind: output, shape index: {}]  }
   0x1   :  { %v48_v0 = vld [vmem:[%s6919_s1 + $0x8] sm:$0xff]  ;;  %v47_v2 = vld [vmem:[%s6919_s1] sm:$0xff]  ;;  %v344_v9 = vunpack.c.l.s4 %v5951_v8  ;;  %v50_v19 = vld [vmem:[%s6919_s1 + $0x18] sm:$0xff] }
   0x2   :  { %v176_v1 = vld [vmem:[%s6919_s1 + $0x408] sm:$0x3]  ;;  %v175_v5 = vld [vmem:[%s6919_s1 + $0x400] sm:$0x3]  ;;  %v347_v15 = vshrl.u32 %v346_v3, 7  ;;  %v114_v24 = vld [vmem:[%s6919_s1 + $0x218] sm:$0xff] }
   0x3   :  { %v5511_v4 = vpack.c.bf16 %v176_v1, %v48_v0  ;;  %v112_v6 = vld [vmem:[%s6919_s1 + $0x208] sm:$0xff]  ;;  %v5513_v10 = vpack.c.bf16 %v175_v5, %v47_v2  ;;  %v111_v12 = vld [vmem:[%s6919_s1 + $0x200] sm:$0xff]  ;;  %v345_v18 = vunpack.c.0.s8 %v344_v9  ;;  %v178_v20 = vld [vmem:[%s6919_s1 + $0x418] sm:$0x3] }
   0x4   :  { %v240_v7 = vld [vmem:[%s6919_s1 + $0x608] sm:$0x3]  ;;  %v239_v13 = vld [vmem:[%s6919_s1 + $0x600] sm:$0x3]  ;;  %v5515_v22 = vpack.c.bf16 %v178_v20, %v50_v19  ;;  %v49_v26 = vld [vmem:[%s6919_s1 + $0x10] sm:$0xff] }
   0x5   :  { %v5639_v11 = vpack.c.bf16 %v240_v7, %v112_v6  ;;  %v15_v14 = vld [vmem:[%s6918_s0] sm:$0xff]  ;;  %5512 = vmatprep.subr.bf16.mxu1 %v5511_v4  ;;  %v5641_v16 = vpack.c.bf16 %v239_v13, %v111_v12  ;;  %v6012_v25 = vsub.s32 %v345_v18, %v347_v15  ;;  %v242_v27 = vld [vmem:[%s6919_s1 + $0x618] sm:$0x3]  ;;  %v177_v28 = vld [vmem:[%s6919_s1 + $0x410] sm:$0x3] }
   0x6   :  { %v342_v17 = vcombine.high %v15_v14, %v15_v14  ;;  %v31_v21 = vld [vmem:[%s6918_s0 + $0x80] sm:$0xff]  ;;  %5514 = vmatpush1.bf16.xpose.msra.mxu1 %v5513_v10  ;;  %v5643_v29 = vpack.c.bf16 %v242_v27, %v114_v24  ;;  %v113_v30 = vld [vmem:[%s6919_s1 + $0x210] sm:$0xff]  ;;  %v52_v35 = vld [vmem:[%s6919_s1 + $0x28] sm:$0xff]  ;;  %v5517_v42 = vpack.c.bf16 %v177_v28, %v49_v26 }
   0x7   :  { %5640 = vmatprep.subr.bf16.mxu0 %v5639_v11  ;;  %v614_v23 = vcombine.high %v31_v21, %v31_v21  ;;  %5516 = vmatprep.subr.bf16.mxu1 %v5515_v22  ;;  %v241_v31 = vld [vmem:[%s6919_s1 + $0x610] sm:$0x3]  ;;  %v349_v32 = vrot.slane %v15_v14, %v6012_v25  ;;  %v621_v33 = vrot.slane %v31_v21, %v6012_v25  ;;  %v180_v36 = vld [vmem:[%s6919_s1 + $0x428] sm:$0x3]  ;;  %v51_v50 = vld [vmem:[%s6919_s1 + $0x20] sm:$0xff] }
   0x8   :  { %5642 = vmatpush1.bf16.xpose.msra.mxu0 %v5641_v16  ;;  %v356_v34 = vrot.slane %v342_v17, %v6012_v25  ;;  %v116_v38 = vld [vmem:[%s6919_s1 + $0x228] sm:$0xff]  ;;  %v5645_v43 = vpack.c.bf16 %v241_v31, %v113_v30  ;;  %v5519_v45 = vpack.c.bf16 %v180_v36, %v52_v35  ;;  %v179_v51 = vld [vmem:[%s6919_s1 + $0x420] sm:$0x3]  ;;  %v54_v55 = vld [vmem:[%s6919_s1 + $0x38] sm:$0xff] }
   0x9   :  { %5644 = vmatprep.subr.bf16.mxu0 %v5643_v29  ;;  %v628_v37 = vrot.slane %v614_v23, %v6012_v25  ;;  %v244_v39 = vld [vmem:[%s6919_s1 + $0x628] sm:$0x3]  ;;  %v357_v40 = vcombine.high %v349_v32, %v349_v32  ;;  %v629_v41 = vcombine.high %v621_v33, %v621_v33  ;;  %v115_v52 = vld [vmem:[%s6919_s1 + $0x220] sm:$0xff]  ;;  %v182_v56 = vld [vmem:[%s6919_s1 + $0x438] sm:$0x3]  ;;  %v5521_v60 = vpack.c.bf16 %v179_v51, %v51_v50 }
   0xa   :  { %v358_v44 = vcombine.high %v356_v34, %v356_v34  ;;  %v5647_v47 = vpack.c.bf16 %v244_v39, %v116_v38  ;;  %v16_v48 = vld [vmem:[%s6918_s0 + $0x8] sm:$0xff]  ;;  %v243_v53 = vld [vmem:[%s6919_s1 + $0x620] sm:$0x3]  ;;  %v118_v58 = vld [vmem:[%s6919_s1 + $0x238] sm:$0xff]  ;;  %v5523_v63 = vpack.c.bf16 %v182_v56, %v54_v55 }
   0xb   :  { %1078 = vmatprep.mubr.f32.mxu1 %v357_v40  ;;  %3318 = vmatprep.mubr.f32.mxu0 %v629_v41  ;;  %v630_v46 = vcombine.high %v628_v37, %v628_v37  ;;  %v32_v49 = vld [vmem:[%s6918_s0 + $0x88] sm:$0xff]  ;;  %v366_v54 = vrot.slane %v16_v48, %v6012_v25  ;;  %v246_v59 = vld [vmem:[%s6919_s1 + $0x638] sm:$0x3]  ;;  %v5649_v61 = vpack.c.bf16 %v243_v53, %v115_v52  ;;  %v53_v4 = vld [vmem:[%s6919_s1 + $0x30] sm:$0xff] }
   0xc   :  { %v638_v57 = vrot.slane %v32_v49, %v6012_v25  ;;  %v359_v0 = vcombine.high %v16_v48, %v16_v48  ;;  %v5651_v2 = vpack.c.bf16 %v246_v59, %v118_v58  ;;  %v631_v3 = vcombine.high %v32_v49, %v32_v49  ;;  %v181_v5 = vld [vmem:[%s6919_s1 + $0x430] sm:$0x3]  ;;  %v56_v9 = vld [vmem:[%s6919_s1 + $0x48] sm:$0xff]  ;;  %v55_v22 = vld [vmem:[%s6919_s1 + $0x40] sm:$0xff] }
   0xd   :  { %1079 = vmatmul.mubr.f32.vlgmr.msra.gmra.mrb[0].mxu1 %v349_v32  ;;  %v374_v62 = vcombine.high %v366_v54, %v366_v54  ;;  %v117_v6 = vld [vmem:[%s6919_s1 + $0x230] sm:$0xff]  ;;  %v184_v10 = vld [vmem:[%s6919_s1 + $0x448] sm:$0x3]  ;;  %v5525_v14 = vpack.c.bf16 %v181_v5, %v53_v4  ;;  %v183_v23 = vld [vmem:[%s6919_s1 + $0x440] sm:$0x3] }
   0xe   :  { %5518 = vmatpush1.bf16.xpose.msra.mxu1 %v5517_v42  ;;  %1148 = vmatprep.mubr.f32.mxu1 %v358_v44  ;;  %v646_v1 = vcombine.high %v638_v57, %v638_v57  ;;  %v245_v7 = vld [vmem:[%s6919_s1 + $0x630] sm:$0x3]  ;;  %v373_v8 = vrot.slane %v359_v0, %v6012_v25  ;;  %v645_v11 = vrot.slane %v631_v3, %v6012_v25  ;;  %v120_v12 = vld [vmem:[%s6919_s1 + $0x248] sm:$0xff]  ;;  %v119_v24 = vld [vmem:[%s6919_s1 + $0x240] sm:$0xff] }
   0xf   :  { %3319 = vmatmul.mubr.f32.vlgmr.msra.gmra.mrb[0].mxu0 %v621_v33  ;;  %5520 = vmatprep.subr.bf16.mxu1 %v5519_v45  ;;  %v248_v13 = vld [vmem:[%s6919_s1 + $0x648] sm:$0x3]  ;;  %v5653_v15 = vpack.c.bf16 %v245_v7, %v117_v6  ;;  %v5527_v17 = vpack.c.bf16 %v184_v10, %v56_v9  ;;  %v17_v20 = vld [vmem:[%s6918_s0 + $0x10] sm:$0xff]  ;;  %v247_v26 = vld [vmem:[%s6919_s1 + $0x640] sm:$0x3]  ;;  %v5529_v33 = vpack.c.bf16 %v183_v23, %v55_v22 }
  0x10   :  { %5646 = vmatpush1.bf16.xpose.msra.mxu0 %v5645_v43  ;;  %3388 = vmatprep.mubr.f32.mxu0 %v630_v46  ;;  %v375_v16 = vcombine.high %v373_v8, %v373_v8  ;;  %v647_v18 = vcombine.high %v645_v11, %v645_v11  ;;  %v5655_v19 = vpack.c.bf16 %v248_v13, %v120_v12  ;;  %v33_v21 = vld [vmem:[%s6918_s0 + $0x90] sm:$0xff]  ;;  %v58_v28 = vld [vmem:[%s6919_s1 + $0x58] sm:$0xff]  ;;  %v60_v46 = vld [vmem:[%s6919_s1 + $0x68] sm:$0xff] }
  0x11   :  { %5648 = vmatprep.subr.bf16.mxu0 %v5647_v47  ;;  %v383_v27 = vrot.slane %v17_v20, %v6012_v25  ;;  %v186_v29 = vld [vmem:[%s6919_s1 + $0x458] sm:$0x3]  ;;  %v655_v30 = vrot.slane %v33_v21, %v6012_v25  ;;  %v648_v40 = vcombine.high %v33_v21, %v33_v21  ;;  %v57_v41 = vld [vmem:[%s6919_s1 + $0x50] sm:$0xff]  ;;  %v188_v47 = vld [vmem:[%s6919_s1 + $0x468] sm:$0x3] }
  0x12   :  { %v122_v31 = vld [vmem:[%s6919_s1 + $0x258] sm:$0xff]  ;;  %v5531_v36 = vpack.c.bf16 %v186_v29, %v58_v28  ;;  %v185_v42 = vld [vmem:[%s6919_s1 + $0x450] sm:$0x3]  ;;  %v124_v49 = vld [vmem:[%s6919_s1 + $0x268] sm:$0xff] }
  0x13   :  { %v250_v32 = vld [vmem:[%s6919_s1 + $0x658] sm:$0x3]  ;;  %v391_v35 = vcombine.high %v383_v27, %v383_v27  ;;  %v663_v38 = vcombine.high %v655_v30, %v655_v30  ;;  %v121_v43 = vld [vmem:[%s6919_s1 + $0x250] sm:$0xff]  ;;  %v662_v48 = vrot.slane %v648_v40, %v6012_v25  ;;  %v252_v50 = vld [vmem:[%s6919_s1 + $0x668] sm:$0x3]  ;;  %v5533_v51 = vpack.c.bf16 %v185_v42, %v57_v41 }
  0x14   :  { %v5659_v39 = vpack.c.bf16 %v250_v32, %v122_v31  ;;  %v249_v44 = vld [vmem:[%s6919_s1 + $0x650] sm:$0x3]  ;;  %v5663_v56 = vpack.c.bf16 %v252_v50, %v124_v49  ;;  %v34_v58 = vld [vmem:[%s6918_s0 + $0x98] sm:$0xff]  ;;  %v59_v59 = vld [vmem:[%s6919_s1 + $0x60] sm:$0xff] }
  0x15   :  { %1149 = vmatmul.mubr.f32.vlgmr.msra.gmra.mrb[0].mxu1 %v356_v34  ;;  %v5657_v34 = vpack.c.bf16 %v247_v26, %v119_v24  ;;  %v5661_v52 = vpack.c.bf16 %v249_v44, %v121_v43  ;;  %v664_v55 = vcombine.high %v662_v48, %v662_v48  ;;  %v62_v0 = vld [vmem:[%s6919_s1 + $0x78] sm:$0xff]  ;;  %v665_v12 = vcombine.high %v34_v58, %v34_v58  ;;  %v61_v13 = vld [vmem:[%s6919_s1 + $0x70] sm:$0xff]  ;;  %v128_v21 = vld [vmem:[%s6919_s1 + $0x288] sm:$0xff] }
  0x16   :  { %5522 = vmatpush1.bf16.xpose.msra.mxu1 %v5521_v60  ;;  %1218 = vmatprep.mubr.f32.mxu1 %v374_v62  ;;  %v187_v60 = vld [vmem:[%s6919_s1 + $0x460] sm:$0x3]  ;;  %v126_v3 = vld [vmem:[%s6919_s1 + $0x278] sm:$0xff]  ;;  %v256_v22 = vld [vmem:[%s6919_s1 + $0x688] sm:$0x3] }
  0x17   :  { %3389 = vmatmul.mubr.f32.vlgmr.msra.gmra.mrb[0].mxu0 %v628_v37  ;;  %5524 = vmatprep.subr.bf16.mxu1 %v5523_v63  ;;  %v376_v37 = vcombine.high %v17_v20, %v17_v20  ;;  %v251_v62 = vld [vmem:[%s6919_s1 + $0x660] sm:$0x3]  ;;  %v254_v4 = vld [vmem:[%s6919_s1 + $0x678] sm:$0x3]  ;;  %v5537_v5 = vpack.c.bf16 %v187_v60, %v59_v59  ;;  %v679_v20 = vrot.slane %v665_v12, %v6012_v25  ;;  %v65_v50 = vld [vmem:[%s6919_s1 + $0x90] sm:$0xff] }
  0x18   :  { %5650 = vmatpush1.bf16.xpose.msra.mxu0 %v5649_v61  ;;  %3458 = vmatprep.mubr.f32.mxu0 %v646_v1  ;;  %v123_v61 = vld [vmem:[%s6919_s1 + $0x260] sm:$0xff]  ;;  %v190_v1 = vld [vmem:[%s6919_s1 + $0x478] sm:$0x3]  ;;  %v5671_v29 = vpack.c.bf16 %v256_v22, %v128_v21  ;;  %v260_v59 = vld [vmem:[%s6919_s1 + $0x6a8] sm:$0x3] }
  0x19   :  { %5652 = vmatprep.subr.bf16.mxu0 %v5651_v2  ;;  %v390_v45 = vrot.slane %v376_v37, %v6012_v25  ;;  %v672_v2 = vrot.slane %v34_v58, %v6012_v25  ;;  %v5665_v6 = vpack.c.bf16 %v251_v62, %v123_v61  ;;  %v681_v28 = vcombine.high %v679_v20, %v679_v20  ;;  %v35_v31 = vld [vmem:[%s6918_s0 + $0xa0] sm:$0xff]  ;;  %v66_v37 = vld [vmem:[%s6919_s1 + $0x98] sm:$0xff]  ;;  %v132_v58 = vld [vmem:[%s6919_s1 + $0x2a8] sm:$0xff] }
  0x1a   :  { %v63_v32 = vld [vmem:[%s6919_s1 + $0x80] sm:$0xff]  ;;  %v130_v40 = vld [vmem:[%s6919_s1 + $0x298] sm:$0xff]  ;;  %v682_v49 = vcombine.high %v35_v31, %v35_v31 }
  0x1b   :  { %v392_v53 = vcombine.high %v390_v45, %v390_v45  ;;  %v680_v10 = vcombine.high %v672_v2, %v672_v2  ;;  %v258_v41 = vld [vmem:[%s6919_s1 + $0x698] sm:$0x3] }
  0x1d   :  { %1219 = vmatmul.mubr.f32.vlgmr.msra.gmra.mrb[0].mxu1 %v366_v54  ;;  %v5535_v54 = vpack.c.bf16 %v188_v47, %v60_v46 }
  0x1e   :  { %5526 = vmatpush1.bf16.xpose.msra.mxu1 %v5525_v14  ;;  %1288 = vmatprep.mubr.f32.mxu1 %v375_v16  ;;  %v189_v14 = vld [vmem:[%s6919_s1 + $0x470] sm:$0x3] }
  0x1f   :  { %3459 = vmatmul.mubr.f32.vlgmr.msra.gmra.mrb[0].mxu0 %v638_v57  ;;  %5528 = vmatprep.subr.bf16.mxu1 %v5527_v17  ;;  %v18_v57 = vld [vmem:[%s6918_s0 + $0x18] sm:$0xff]  ;;  %v253_v16 = vld [vmem:[%s6919_s1 + $0x670] sm:$0x3]  ;;  %v5541_v23 = vpack.c.bf16 %v189_v14, %v61_v13 }
  0x20   :  { %5654 = vmatpush1.bf16.xpose.msra.mxu0 %v5653_v15  ;;  %3528 = vmatprep.mubr.f32.mxu0 %v647_v18  ;;  %v400_v63 = vrot.slane %v18_v57, %v6012_v25  ;;  %v393_v9 = vcombine.high %v18_v57, %v18_v57  ;;  %v125_v15 = vld [vmem:[%s6919_s1 + $0x270] sm:$0xff]  ;;  %v64_v18 = vld [vmem:[%s6919_s1 + $0x88] sm:$0xff]  ;;  %v696_v57 = vrot.slane %v682_v49, %v6012_v25 }
  0x21   :  { %5656 = vmatprep.subr.bf16.mxu0 %v5655_v19  ;;  %v192_v19 = vld [vmem:[%s6919_s1 + $0x488] sm:$0x3]  ;;  %v5669_v24 = vpack.c.bf16 %v253_v16, %v125_v15 }
  0x22   :  { %v408_v7 = vcombine.high %v400_v63, %v400_v63  ;;  %v407_v17 = vrot.slane %v393_v9, %v6012_v25 }
  0x24   :  { %v409_v26 = vcombine.high %v407_v17, %v407_v17 }
  0x25   :  { %1289 = vmatmul.mubr.f32.vlgmr.msra.gmra.mrb[0].mxu1 %v373_v8  ;;  %v5539_v8 = vpack.c.bf16 %v190_v1, %v62_v0  ;;  %v698_v0 = vcombine.high %v696_v57, %v696_v57  ;;  %v5679_v1 = vpack.c.bf16 %v260_v59, %v132_v58 }
  0x26   :  { %5530 = vmatpush1.bf16.xpose.msra.mxu1 %v5529_v33  ;;  %1358 = vmatprep.mubr.f32.mxu1 %v391_v35  ;;  %v191_v33 = vld [vmem:[%s6919_s1 + $0x480] sm:$0x3] }
  0x27   :  { %3529 = vmatmul.mubr.f32.vlgmr.msra.gmra.mrb[0].mxu0 %v645_v11  ;;  %5532 = vmatprep.subr.bf16.mxu1 %v5531_v36  ;;  %v5667_v11 = vpack.c.bf16 %v254_v4, %v126_v3  ;;  %v255_v35 = vld [vmem:[%s6919_s1 + $0x680] sm:$0x3]  ;;  %v5545_v42 = vpack.c.bf16 %v191_v33, %v63_v32  ;;  %v36_v3 = vld [vmem:[%s6918_s0 + $0xa8] sm:$0xff] }
  0x28   :  { %5658 = vmatpush1.bf16.xpose.msra.mxu0 %v5657_v34  ;;  %3598 = vmatprep.mubr.f32.mxu0 %v663_v38  ;;  %v127_v34 = vld [vmem:[%s6919_s1 + $0x280] sm:$0xff]  ;;  %v194_v38 = vld [vmem:[%s6919_s1 + $0x498] sm:$0x3] }
  0x29   :  { %5660 = vmatprep.subr.bf16.mxu0 %v5659_v39  ;;  %v689_v39 = vrot.slane %v35_v31, %v6012_v25  ;;  %v5673_v43 = vpack.c.bf16 %v255_v35, %v127_v34  ;;  %v67_v4 = vld [vmem:[%s6919_s1 + $0xa0] sm:$0xff] }
  0x2b   :  { %v697_v47 = vcombine.high %v689_v39, %v689_v39 }
  0x2d   :  { %1359 = vmatmul.mubr.f32.vlgmr.msra.gmra.mrb[0].mxu1 %v383_v27  ;;  %v5543_v27 = vpack.c.bf16 %v192_v19, %v64_v18 }
  0x2e   :  { %5534 = vmatpush1.bf16.xpose.msra.mxu1 %v5533_v51  ;;  %1428 = vmatprep.mubr.f32.mxu1 %v392_v53  ;;  %v193_v51 = vld [vmem:[%s6919_s1 + $0x490] sm:$0x3] }
  0x2f   :  { %3599 = vmatmul.mubr.f32.vlgmr.msra.gmra.mrb[0].mxu0 %v655_v30  ;;  %5536 = vmatprep.subr.bf16.mxu1 %v5535_v54  ;;  %v19_v30 = vld [vmem:[%s6918_s0 + $0x20] sm:$0xff]  ;;  %v257_v53 = vld [vmem:[%s6919_s1 + $0x690] sm:$0x3]  ;;  %v5549_v60 = vpack.c.bf16 %v193_v51, %v65_v50 }
  0x30   :  { %5662 = vmatpush1.bf16.xpose.msra.mxu0 %v5661_v52  ;;  %3668 = vmatprep.mubr.f32.mxu0 %v664_v55  ;;  %v417_v36 = vrot.slane %v19_v30, %v6012_v25  ;;  %v410_v46 = vcombine.high %v19_v30, %v19_v30  ;;  %v129_v52 = vld [vmem:[%s6919_s1 + $0x290] sm:$0xff]  ;;  %v68_v55 = vld [vmem:[%s6919_s1 + $0xa8] sm:$0xff] }
  0x31   :  { %5664 = vmatprep.subr.bf16.mxu0 %v5663_v56  ;;  %v196_v56 = vld [vmem:[%s6919_s1 + $0x4a8] sm:$0x3]  ;;  %v5677_v61 = vpack.c.bf16 %v257_v53, %v129_v52 }
  0x32   :  { %v425_v44 = vcombine.high %v417_v36, %v417_v36  ;;  %v424_v54 = vrot.slane %v410_v46, %v6012_v25 }
  0x34   :  { %v426_v62 = vcombine.high %v424_v54, %v424_v54 }
  0x35   :  { %1429 = vmatmul.mubr.f32.vlgmr.msra.gmra.mrb[0].mxu1 %v390_v45  ;;  %v5547_v45 = vpack.c.bf16 %v194_v38, %v66_v37 }
  0x36   :  { %5538 = vmatpush1.bf16.xpose.msra.mxu1 %v5537_v5  ;;  %1498 = vmatprep.mubr.f32.mxu1 %v408_v7  ;;  %v195_v5 = vld [vmem:[%s6919_s1 + $0x4a0] sm:$0x3] }
  0x37   :  { %3669 = vmatmul.mubr.f32.vlgmr.msra.gmra.mrb[0].mxu0 %v662_v48  ;;  %5540 = vmatprep.subr.bf16.mxu1 %v5539_v8  ;;  %v5675_v48 = vpack.c.bf16 %v258_v41, %v130_v40  ;;  %v259_v7 = vld [vmem:[%s6919_s1 + $0x6a0] sm:$0x3] }
  0x38   :  { %5666 = vmatpush1.bf16.xpose.msra.mxu0 %v5665_v6  ;;  %3738 = vmatprep.mubr.f32.mxu0 %v680_v10  ;;  %v131_v6 = vld [vmem:[%s6919_s1 + $0x2a0] sm:$0xff] }
  0x39   :  { %5668 = vmatprep.subr.bf16.mxu0 %v5667_v11 }
  0x3d   :  { %1499 = vmatmul.mubr.f32.vlgmr.msra.gmra.mrb[0].mxu1 %v400_v63  ;;  %v5551_v63 = vpack.c.bf16 %v196_v56, %v68_v55 }
  0x3e   :  { %5542 = vmatpush1.bf16.xpose.msra.mxu1 %v5541_v23  ;;  %1568 = vmatprep.mubr.f32.mxu1 %v409_v26 }
  0x3f   :  { %3739 = vmatmul.mubr.f32.vlgmr.msra.gmra.mrb[0].mxu0 %v672_v2  ;;  %5544 = vmatprep.subr.bf16.mxu1 %v5543_v27  ;;  %v20_v2 = vld [vmem:[%s6918_s0 + $0x28] sm:$0xff] }
  0x40   :  { %5670 = vmatpush1.bf16.xpose.msra.mxu0 %v5669_v24  ;;  %3808 = vmatprep.mubr.f32.mxu0 %v681_v28  ;;  %v434_v8 = vrot.slane %v20_v2, %v6012_v25 }
  0x41   :  { %5672 = vmatprep.subr.bf16.mxu0 %v5671_v29 }
  0x45   :  { %1569 = vmatmul.mubr.f32.vlgmr.msra.gmra.mrb[0].mxu1 %v407_v17 }
  0x46   :  { %5546 = vmatpush1.bf16.xpose.msra.mxu1 %v5545_v42  ;;  %1638 = vmatprep.mubr.f32.mxu1 %v425_v44 }
  0x47   :  { %3809 = vmatmul.mubr.f32.vlgmr.msra.gmra.mrb[0].mxu0 %v679_v20  ;;  %5548 = vmatprep.subr.bf16.mxu1 %v5547_v45 }
  0x48   :  { %5674 = vmatpush1.bf16.xpose.msra.mxu0 %v5673_v43  ;;  %3878 = vmatprep.mubr.f32.mxu0 %v697_v47 }
  0x49   :  { %5676 = vmatprep.subr.bf16.mxu0 %v5675_v48 }
  0x4d   :  { %1639 = vmatmul.mubr.f32.vlgmr.msra.gmra.mrb[0].mxu1 %v417_v36 }
  0x4e   :  { %5550 = vmatpush1.bf16.xpose.msra.mxu1 %v5549_v60  ;;  %1708 = vmatprep.mubr.f32.mxu1 %v426_v62 }
  0x4f   :  { %3879 = vmatmul.mubr.f32.vlgmr.msra.gmra.mrb[0].mxu0 %v689_v39  ;;  %5552 = vmatprep.subr.bf16.mxu1 %v5551_v63 }
  0x50   :  { %5678 = vmatpush1.bf16.xpose.msra.mxu0 %v5677_v61 }
  0x51   :  { %8 = vsyncpa [#allocation3], 0  ;;  %3948 = vmatprep.mubr.f32.mxu0 %v698_v0  ;;  %5680 = vmatprep.subr.bf16.mxu0 %v5679_v1  ;;  %v70_v9 = vld [vmem:[%s6919_s1 + $0xb8] sm:$0xff]  ;;  %v706_v11 = vrot.slane %v36_v3, %v6012_v25  ;;  %v5553_v14 = vpack.c.bf16 %v195_v5, %v67_v4  ;;  %v5681_v15 = vpack.c.bf16 %v259_v7, %v131_v6  ;;  %v69_v22 = vld [vmem:[%s6919_s1 + $0xb0] sm:$0xff]  ;;  %s5952_s21 = smov [#allocation2]   ;;  %vm5494_vm0 = vcmask 74752  }
  0x52   :  { %v198_v10 = vld [vmem:[%s6919_s1 + $0x4b8] sm:$0x3]  ;;  %v442_v16 = vcombine.high %v434_v8, %v434_v8  ;;  %v427_v18 = vcombine.high %v20_v2, %v20_v2  ;;  %v699_v21 = vcombine.high %v36_v3, %v36_v3  ;;  %v197_v23 = vld [vmem:[%s6919_s1 + $0x4b0] sm:$0x3]  ;;  %v72_v28 = vld [vmem:[%s6919_s1 + $0xc8] sm:$0xff]  ;;  %s5502_s22 = sshll.u32 %s5952_s21, 4  ;;  %s5503_s22 = int_to_ptr.vmem [resolvable:$true] %s5502_s22 }
  0x53   :  { %v134_v12 = vld [vmem:[%s6919_s1 + $0x2b8] sm:$0xff]  ;;  %v5555_v17 = vpack.c.bf16 %v198_v10, %v70_v9  ;;  %v714_v19 = vcombine.high %v706_v11, %v706_v11  ;;  %v133_v24 = vld [vmem:[%s6919_s1 + $0x2b0] sm:$0xff]  ;;  %v200_v29 = vld [vmem:[%s6919_s1 + $0x4c8] sm:$0x3]  ;;  %v5557_v33 = vpack.c.bf16 %v197_v23, %v69_v22  ;;  %s5927_s23 = scalar_lea.vmem %s5503_s22, 32  ;;  %p5932_p1 = scmp.lt.s32.totalorder %s5503_s22, %s5503_s22 }
  0x54   :  { %v262_v13 = vld [vmem:[%s6919_s1 + $0x6b8] sm:$0x3]  ;;  %v261_v26 = vld [vmem:[%s6919_s1 + $0x6b0] sm:$0x3]  ;;  %v441_v27 = vrot.slane %v427_v18, %v6012_v25  ;;  %v713_v30 = vrot.slane %v699_v21, %v6012_v25  ;;  %v136_v31 = vld [vmem:[%s6919_s1 + $0x2c8] sm:$0xff]  ;;  %v5559_v36 = vpack.c.bf16 %v200_v29, %v72_v28  ;;  %p5928_p0 = scmp.ne.s32.totalorder %s5503_s22, %s5927_s23  ;;  %p5933_p2 = scmp.lt.s32.totalorder %s5927_s23, %s5927_s23 }
  0x55   :  { %v5683_v20 = vpack.c.bf16 %v262_v13, %v134_v12  ;;  %1709 = vmatmul.mubr.f32.vlgmr.msra.gmra.mrb[0].mxu1 %v424_v54  ;;  %v264_v32 = vld [vmem:[%s6919_s1 + $0x6c8] sm:$0x3]  ;;  %v5685_v34 = vpack.c.bf16 %v261_v26, %v133_v24  ;;  %v21_v39 = vld [vmem:[%s6918_s0 + $0x30] sm:$0xff]  ;;  %v71_v41 = vld [vmem:[%s6919_s1 + $0xc0] sm:$0xff] }
  0x56   :  { %5554 = vmatpush1.bf16.xpose.msra.mxu1 %v5553_v14  ;;  %1778 = vmatprep.mubr.f32.mxu1 %v442_v16  ;;  %v443_v35 = vcombine.high %v441_v27, %v441_v27  ;;  %v715_v37 = vcombine.high %v713_v30, %v713_v30  ;;  %v5687_v38 = vpack.c.bf16 %v264_v32, %v136_v31  ;;  %v37_v40 = vld [vmem:[%s6918_s0 + $0xb0] sm:$0xff]  ;;  %v199_v42 = vld [vmem:[%s6919_s1 + $0x4c0] sm:$0x3]  ;;  %v74_v46 = vld [vmem:[%s6919_s1 + $0xd8] sm:$0xff]  ;;  %p5934_p3 = por %p5933_p2, %p5932_p1 }
  0x57   :  { %3949 = vmatmul.mubr.f32.vlgmr.msra.gmra.mrb[0].mxu0 %v696_v57  ;;  %5556 = vmatprep.subr.bf16.mxu1 %v5555_v17  ;;  %v135_v43 = vld [vmem:[%s6919_s1 + $0x2c0] sm:$0xff]  ;;  %v451_v45 = vrot.slane %v21_v39, %v6012_v25  ;;  %v202_v47 = vld [vmem:[%s6919_s1 + $0x4d8] sm:$0x3]  ;;  %v723_v48 = vrot.slane %v37_v40, %v6012_v25  ;;  %v5561_v51 = vpack.c.bf16 %v199_v42, %v71_v41  ;;  %v73_v59 = vld [vmem:[%s6919_s1 + $0xd0] sm:$0xff] }
  0x58   :  { %5682 = vmatpush1.bf16.xpose.msra.mxu0 %v5681_v15  ;;  %4018 = vmatprep.mubr.f32.mxu0 %v714_v19  ;;  %v263_v44 = vld [vmem:[%s6919_s1 + $0x6c0] sm:$0x3]  ;;  %v138_v49 = vld [vmem:[%s6919_s1 + $0x2d8] sm:$0xff]  ;;  %v5563_v54 = vpack.c.bf16 %v202_v47, %v74_v46  ;;  %v444_v55 = vcombine.high %v21_v39, %v21_v39  ;;  %v716_v58 = vcombine.high %v37_v40, %v37_v40  ;;  %v201_v60 = vld [vmem:[%s6919_s1 + $0x4d0] sm:$0x3]  ;;  %p5935_p4 = pnand %p5934_p3, %p5928_p0 }
  0x59   :  { %5684 = vmatprep.subr.bf16.mxu0 %v5683_v20  ;;  %v266_v50 = vld [vmem:[%s6919_s1 + $0x6d8] sm:$0x3]  ;;  %v5689_v52 = vpack.c.bf16 %v263_v44, %v135_v43  ;;  %v459_v53 = vcombine.high %v451_v45, %v451_v45  ;;  %v731_v56 = vcombine.high %v723_v48, %v723_v48  ;;  %v137_v61 = vld [vmem:[%s6919_s1 + $0x2d0] sm:$0xff]  ;;  %v76_v0 = vld [vmem:[%s6919_s1 + $0xe8] sm:$0xff]  ;;  %v5565_v5 = vpack.c.bf16 %v201_v60, %v73_v59 }
  0x5a   :  { %v5691_v57 = vpack.c.bf16 %v266_v50, %v138_v49  ;;  %v265_v62 = vld [vmem:[%s6919_s1 + $0x6d0] sm:$0x3]  ;;  %v458_v63 = vrot.slane %v444_v55, %v6012_v25  ;;  %v204_v1 = vld [vmem:[%s6919_s1 + $0x4e8] sm:$0x3]  ;;  %v730_v2 = vrot.slane %v716_v58, %v6012_v25  ;;  %v38_v12 = vld [vmem:[%s6918_s0 + $0xb8] sm:$0xff] }
  0x5b   :  { %v140_v3 = vld [vmem:[%s6919_s1 + $0x2e8] sm:$0xff]  ;;  %v5693_v6 = vpack.c.bf16 %v265_v62, %v137_v61  ;;  %v75_v13 = vld [vmem:[%s6919_s1 + $0xe0] sm:$0xff]  ;;  %v78_v18 = vld [vmem:[%s6919_s1 + $0xf8] sm:$0xff]  ;;  %v740_v20 = vrot.slane %v38_v12, %v6012_v25  ;;  %v733_v31 = vcombine.high %v38_v12, %v38_v12 }
  0x5c   :  { %v268_v4 = vld [vmem:[%s6919_s1 + $0x6e8] sm:$0x3]  ;;  %v460_v7 = vcombine.high %v458_v63, %v458_v63  ;;  %v732_v9 = vcombine.high %v730_v2, %v730_v2  ;;  %v203_v14 = vld [vmem:[%s6919_s1 + $0x4e0] sm:$0x3]  ;;  %v206_v19 = vld [vmem:[%s6919_s1 + $0x4f8] sm:$0x3] }
  0x5d   :  { %1779 = vmatmul.mubr.f32.vlgmr.msra.gmra.mrb[0].mxu1 %v434_v8  ;;  %v5567_v8 = vpack.c.bf16 %v204_v1, %v76_v0  ;;  %v5695_v10 = vpack.c.bf16 %v268_v4, %v140_v3  ;;  %v139_v15 = vld [vmem:[%s6919_s1 + $0x2e0] sm:$0xff]  ;;  %v142_v21 = vld [vmem:[%s6919_s1 + $0x2f8] sm:$0xff]  ;;  %v5569_v23 = vpack.c.bf16 %v203_v14, %v75_v13  ;;  %v748_v29 = vcombine.high %v740_v20, %v740_v20  ;;  %v77_v32 = vld [vmem:[%s6919_s1 + $0xf0] sm:$0xff] }
  0x5e   :  { %5558 = vmatpush1.bf16.xpose.msra.mxu1 %v5557_v33  ;;  %1848 = vmatprep.mubr.f32.mxu1 %v443_v35  ;;  %v267_v16 = vld [vmem:[%s6919_s1 + $0x6e0] sm:$0x3]  ;;  %v270_v22 = vld [vmem:[%s6919_s1 + $0x6f8] sm:$0x3]  ;;  %v205_v33 = vld [vmem:[%s6919_s1 + $0x4f0] sm:$0x3]  ;;  %v747_v39 = vrot.slane %v733_v31, %v6012_v25 }
  0x5f   :  { %4019 = vmatmul.mubr.f32.vlgmr.msra.gmra.mrb[0].mxu0 %v706_v11  ;;  %5560 = vmatprep.subr.bf16.mxu1 %v5559_v36  ;;  %v22_v11 = vld [vmem:[%s6918_s0 + $0x38] sm:$0xff]  ;;  %v5697_v24 = vpack.c.bf16 %v267_v16, %v139_v15  ;;  %v269_v35 = vld [vmem:[%s6919_s1 + $0x6f0] sm:$0x3]  ;;  %v144_v40 = vld [vmem:[%s6919_s1 + $0x308] sm:$0xff]  ;;  %v5573_v42 = vpack.c.bf16 %v205_v33, %v77_v32 }
  0x60   :  { %5686 = vmatpush1.bf16.xpose.msra.mxu0 %v5685_v34  ;;  %4088 = vmatprep.mubr.f32.mxu0 %v715_v37  ;;  %v468_v17 = vrot.slane %v22_v11, %v6012_v25  ;;  %v461_v28 = vcombine.high %v22_v11, %v22_v11  ;;  %v141_v34 = vld [vmem:[%s6919_s1 + $0x2f0] sm:$0xff]  ;;  %v80_v37 = vld [vmem:[%s6919_s1 + $0x108] sm:$0xff]  ;;  %v749_v46 = vcombine.high %v747_v39, %v747_v39  ;;  %v39_v49 = vld [vmem:[%s6918_s0 + $0xc0] sm:$0xff] }
  0x61   :  { %5688 = vmatprep.subr.bf16.mxu0 %v5687_v38  ;;  %v208_v38 = vld [vmem:[%s6919_s1 + $0x508] sm:$0x3]  ;;  %v5701_v43 = vpack.c.bf16 %v269_v35, %v141_v34  ;;  %v79_v50 = vld [vmem:[%s6919_s1 + $0x100] sm:$0xff]  ;;  %v82_v55 = vld [vmem:[%s6919_s1 + $0x118] sm:$0xff]  ;;  %v750_v3 = vcombine.high %v39_v49, %v39_v49 }
  0x62   :  { %v476_v26 = vcombine.high %v468_v17, %v468_v17  ;;  %v475_v36 = vrot.slane %v461_v28, %v6012_v25  ;;  %v272_v41 = vld [vmem:[%s6919_s1 + $0x708] sm:$0x3]  ;;  %v146_v58 = vld [vmem:[%s6919_s1 + $0x318] sm:$0xff]  ;;  %v81_v4 = vld [vmem:[%s6919_s1 + $0x110] sm:$0xff] }
  0x63   :  { %v5703_v47 = vpack.c.bf16 %v272_v41, %v144_v40  ;;  %v274_v59 = vld [vmem:[%s6919_s1 + $0x718] sm:$0x3]  ;;  %v764_v11 = vrot.slane %v750_v3, %v6012_v25  ;;  %v148_v12 = vld [vmem:[%s6919_s1 + $0x328] sm:$0xff]  ;;  %v85_v41 = vld [vmem:[%s6919_s1 + $0x130] sm:$0xff] }
  0x64   :  { %v477_v44 = vcombine.high %v475_v36, %v475_v36  ;;  %v276_v13 = vld [vmem:[%s6919_s1 + $0x728] sm:$0x3]  ;;  %v86_v28 = vld [vmem:[%s6919_s1 + $0x138] sm:$0xff] }
  0x65   :  { %1849 = vmatmul.mubr.f32.vlgmr.msra.gmra.mrb[0].mxu1 %v441_v27  ;;  %v5571_v27 = vpack.c.bf16 %v206_v19, %v78_v18  ;;  %v766_v18 = vcombine.high %v764_v11, %v764_v11  ;;  %v5711_v19 = vpack.c.bf16 %v276_v13, %v148_v12  ;;  %v150_v31 = vld [vmem:[%s6919_s1 + $0x338] sm:$0xff]  ;;  %v89_v13 = vld [vmem:[%s6919_s1 + $0x150] sm:$0xff] }
  0x66   :  { %5562 = vmatpush1.bf16.xpose.msra.mxu1 %v5561_v51  ;;  %1918 = vmatprep.mubr.f32.mxu1 %v459_v53  ;;  %v207_v51 = vld [vmem:[%s6919_s1 + $0x500] sm:$0x3]  ;;  %v278_v32 = vld [vmem:[%s6919_s1 + $0x738] sm:$0x3] }
  0x67   :  { %4089 = vmatmul.mubr.f32.vlgmr.msra.gmra.mrb[0].mxu0 %v713_v30  ;;  %5564 = vmatprep.subr.bf16.mxu1 %v5563_v54  ;;  %v5699_v30 = vpack.c.bf16 %v270_v22, %v142_v21  ;;  %v271_v53 = vld [vmem:[%s6919_s1 + $0x700] sm:$0x3]  ;;  %v5577_v60 = vpack.c.bf16 %v207_v51, %v79_v50  ;;  %v40_v21 = vld [vmem:[%s6918_s0 + $0xc8] sm:$0xff]  ;;  %v154_v3 = vld [vmem:[%s6919_s1 + $0x358] sm:$0xff] }
  0x68   :  { %5690 = vmatpush1.bf16.xpose.msra.mxu0 %v5689_v52  ;;  %4158 = vmatprep.mubr.f32.mxu0 %v731_v56  ;;  %v143_v52 = vld [vmem:[%s6919_s1 + $0x300] sm:$0xff]  ;;  %v210_v56 = vld [vmem:[%s6919_s1 + $0x518] sm:$0x3]  ;;  %v767_v40 = vcombine.high %v40_v21, %v40_v21  ;;  %v280_v50 = vld [vmem:[%s6919_s1 + $0x748] sm:$0x3] }
  0x69   :  { %5692 = vmatprep.subr.bf16.mxu0 %v5691_v57  ;;  %v757_v57 = vrot.slane %v39_v49, %v6012_v25  ;;  %v5705_v61 = vpack.c.bf16 %v271_v53, %v143_v52  ;;  %v83_v22 = vld [vmem:[%s6919_s1 + $0x120] sm:$0xff]  ;;  %v152_v49 = vld [vmem:[%s6919_s1 + $0x348] sm:$0xff] }
  0x6b   :  { %v765_v1 = vcombine.high %v757_v57, %v757_v57 }
  0x6d   :  { %1919 = vmatmul.mubr.f32.vlgmr.msra.gmra.mrb[0].mxu1 %v451_v45  ;;  %v5575_v45 = vpack.c.bf16 %v208_v38, %v80_v37 }
  0x6e   :  { %5566 = vmatpush1.bf16.xpose.msra.mxu1 %v5565_v5  ;;  %1988 = vmatprep.mubr.f32.mxu1 %v460_v7  ;;  %v209_v5 = vld [vmem:[%s6919_s1 + $0x510] sm:$0x3] }
  0x6f   :  { %4159 = vmatmul.mubr.f32.vlgmr.msra.gmra.mrb[0].mxu0 %v723_v48  ;;  %5568 = vmatprep.subr.bf16.mxu1 %v5567_v8  ;;  %v23_v48 = vld [vmem:[%s6918_s0 + $0x40] sm:$0xff]  ;;  %v273_v7 = vld [vmem:[%s6919_s1 + $0x710] sm:$0x3]  ;;  %v5581_v14 = vpack.c.bf16 %v209_v5, %v81_v4  ;;  %v282_v4 = vld [vmem:[%s6919_s1 + $0x758] sm:$0x3] }
  0x70   :  { %5694 = vmatpush1.bf16.xpose.msra.mxu0 %v5693_v6  ;;  %4228 = vmatprep.mubr.f32.mxu0 %v732_v9  ;;  %v485_v54 = vrot.slane %v23_v48, %v6012_v25  ;;  %v478_v0 = vcombine.high %v23_v48, %v23_v48  ;;  %v145_v6 = vld [vmem:[%s6919_s1 + $0x310] sm:$0xff]  ;;  %v84_v9 = vld [vmem:[%s6919_s1 + $0x128] sm:$0xff]  ;;  %v781_v48 = vrot.slane %v767_v40, %v6012_v25  ;;  %v158_v40 = vld [vmem:[%s6919_s1 + $0x378] sm:$0xff] }
  0x71   :  { %5696 = vmatprep.subr.bf16.mxu0 %v5695_v10  ;;  %v212_v10 = vld [vmem:[%s6919_s1 + $0x528] sm:$0x3]  ;;  %v5709_v15 = vpack.c.bf16 %v273_v7, %v145_v6 }
  0x72   :  { %v493_v62 = vcombine.high %v485_v54, %v485_v54  ;;  %v492_v8 = vrot.slane %v478_v0, %v6012_v25  ;;  %v90_v0 = vld [vmem:[%s6919_s1 + $0x158] sm:$0xff] }
  0x74   :  { %v494_v16 = vcombine.high %v492_v8, %v492_v8 }
  0x75   :  { %1989 = vmatmul.mubr.f32.vlgmr.msra.gmra.mrb[0].mxu1 %v458_v63  ;;  %v5579_v63 = vpack.c.bf16 %v210_v56, %v82_v55  ;;  %v783_v55 = vcombine.high %v781_v48, %v781_v48  ;;  %v5719_v56 = vpack.c.bf16 %v280_v50, %v152_v49  ;;  %v93_v50 = vld [vmem:[%s6919_s1 + $0x170] sm:$0xff] }
  0x76   :  { %5570 = vmatpush1.bf16.xpose.msra.mxu1 %v5569_v23  ;;  %2058 = vmatprep.mubr.f32.mxu1 %v476_v26  ;;  %v211_v23 = vld [vmem:[%s6919_s1 + $0x520] sm:$0x3] }
  0x77   :  { %4229 = vmatmul.mubr.f32.vlgmr.msra.gmra.mrb[0].mxu0 %v730_v2  ;;  %5572 = vmatprep.subr.bf16.mxu1 %v5571_v27  ;;  %v5707_v2 = vpack.c.bf16 %v274_v59, %v146_v58  ;;  %v275_v26 = vld [vmem:[%s6919_s1 + $0x720] sm:$0x3]  ;;  %v5585_v33 = vpack.c.bf16 %v211_v23, %v83_v22  ;;  %v41_v58 = vld [vmem:[%s6918_s0 + $0xd0] sm:$0xff]  ;;  %v284_v22 = vld [vmem:[%s6919_s1 + $0x768] sm:$0x3] }
  0x78   :  { %5698 = vmatpush1.bf16.xpose.msra.mxu0 %v5697_v24  ;;  %4298 = vmatprep.mubr.f32.mxu0 %v748_v29  ;;  %v147_v24 = vld [vmem:[%s6919_s1 + $0x320] sm:$0xff]  ;;  %v214_v29 = vld [vmem:[%s6919_s1 + $0x538] sm:$0x3]  ;;  %v784_v12 = vcombine.high %v41_v58, %v41_v58 }
  0x79   :  { %5700 = vmatprep.subr.bf16.mxu0 %v5699_v30  ;;  %v774_v30 = vrot.slane %v40_v21, %v6012_v25  ;;  %v5713_v34 = vpack.c.bf16 %v275_v26, %v147_v24  ;;  %v87_v59 = vld [vmem:[%s6919_s1 + $0x140] sm:$0xff]  ;;  %v156_v21 = vld [vmem:[%s6919_s1 + $0x368] sm:$0xff] }
  0x7b   :  { %v782_v38 = vcombine.high %v774_v30, %v774_v30 }
  0x7d   :  { %2059 = vmatmul.mubr.f32.vlgmr.msra.gmra.mrb[0].mxu1 %v468_v17  ;;  %v5583_v17 = vpack.c.bf16 %v212_v10, %v84_v9 }
  0x7e   :  { %5574 = vmatpush1.bf16.xpose.msra.mxu1 %v5573_v42  ;;  %2128 = vmatprep.mubr.f32.mxu1 %v477_v44  ;;  %v213_v42 = vld [vmem:[%s6919_s1 + $0x530] sm:$0x3] }
  0x7f   :  { %4299 = vmatmul.mubr.f32.vlgmr.msra.gmra.mrb[0].mxu0 %v740_v20  ;;  %5576 = vmatprep.subr.bf16.mxu1 %v5575_v45  ;;  %v24_v20 = vld [vmem:[%s6918_s0 + $0x48] sm:$0xff]  ;;  %v277_v44 = vld [vmem:[%s6919_s1 + $0x730] sm:$0x3]  ;;  %v5589_v51 = vpack.c.bf16 %v213_v42, %v85_v41  ;;  %v286_v41 = vld [vmem:[%s6919_s1 + $0x778] sm:$0x3] }
  0x80   :  { %5702 = vmatpush1.bf16.xpose.msra.mxu0 %v5701_v43  ;;  %4368 = vmatprep.mubr.f32.mxu0 %v749_v46  ;;  %v502_v27 = vrot.slane %v24_v20, %v6012_v25  ;;  %v495_v37 = vcombine.high %v24_v20, %v24_v20  ;;  %v149_v43 = vld [vmem:[%s6919_s1 + $0x330] sm:$0xff]  ;;  %v88_v46 = vld [vmem:[%s6919_s1 + $0x148] sm:$0xff]  ;;  %v798_v20 = vrot.slane %v784_v12, %v6012_v25  ;;  %v162_v12 = vld [vmem:[%s6919_s1 + $0x398] sm:$0xff] }
  0x81   :  { %5704 = vmatprep.subr.bf16.mxu0 %v5703_v47  ;;  %v216_v47 = vld [vmem:[%s6919_s1 + $0x548] sm:$0x3]  ;;  %v5717_v52 = vpack.c.bf16 %v277_v44, %v149_v43 }
  0x82   :  { %v510_v35 = vcombine.high %v502_v27, %v502_v27  ;;  %v509_v45 = vrot.slane %v495_v37, %v6012_v25  ;;  %v94_v37 = vld [vmem:[%s6919_s1 + $0x178] sm:$0xff] }
  0x84   :  { %v511_v53 = vcombine.high %v509_v45, %v509_v45 }
  0x85   :  { %2129 = vmatmul.mubr.f32.vlgmr.msra.gmra.mrb[0].mxu1 %v475_v36  ;;  %v5587_v36 = vpack.c.bf16 %v214_v29, %v86_v28  ;;  %v800_v28 = vcombine.high %v798_v20, %v798_v20  ;;  %v5727_v29 = vpack.c.bf16 %v284_v22, %v156_v21  ;;  %v97_v22 = vld [vmem:[%s6919_s1 + $0x190] sm:$0xff] }
  0x86   :  { %5578 = vmatpush1.bf16.xpose.msra.mxu1 %v5577_v60  ;;  %2198 = vmatprep.mubr.f32.mxu1 %v493_v62  ;;  %v215_v60 = vld [vmem:[%s6919_s1 + $0x540] sm:$0x3] }
  0x87   :  { %4369 = vmatmul.mubr.f32.vlgmr.msra.gmra.mrb[0].mxu0 %v747_v39  ;;  %5580 = vmatprep.subr.bf16.mxu1 %v5579_v63  ;;  %v5715_v39 = vpack.c.bf16 %v278_v32, %v150_v31  ;;  %v279_v62 = vld [vmem:[%s6919_s1 + $0x740] sm:$0x3]  ;;  %v5593_v5 = vpack.c.bf16 %v215_v60, %v87_v59  ;;  %v42_v31 = vld [vmem:[%s6918_s0 + $0xd8] sm:$0xff]  ;;  %v288_v59 = vld [vmem:[%s6919_s1 + $0x788] sm:$0x3] }
  0x88   :  { %5706 = vmatpush1.bf16.xpose.msra.mxu0 %v5705_v61  ;;  %4438 = vmatprep.mubr.f32.mxu0 %v765_v1  ;;  %v151_v61 = vld [vmem:[%s6919_s1 + $0x340] sm:$0xff]  ;;  %v218_v1 = vld [vmem:[%s6919_s1 + $0x558] sm:$0x3]  ;;  %v801_v49 = vcombine.high %v42_v31, %v42_v31 }
  0x89   :  { %5708 = vmatprep.subr.bf16.mxu0 %v5707_v2  ;;  %v791_v2 = vrot.slane %v41_v58, %v6012_v25  ;;  %v5721_v6 = vpack.c.bf16 %v279_v62, %v151_v61  ;;  %v91_v32 = vld [vmem:[%s6919_s1 + $0x160] sm:$0xff]  ;;  %v160_v58 = vld [vmem:[%s6919_s1 + $0x388] sm:$0xff] }
  0x8b   :  { %v799_v10 = vcombine.high %v791_v2, %v791_v2 }
  0x8d   :  { %2199 = vmatmul.mubr.f32.vlgmr.msra.gmra.mrb[0].mxu1 %v485_v54  ;;  %v5591_v54 = vpack.c.bf16 %v216_v47, %v88_v46 }
  0x8e   :  { %5582 = vmatpush1.bf16.xpose.msra.mxu1 %v5581_v14  ;;  %2268 = vmatprep.mubr.f32.mxu1 %v494_v16  ;;  %v217_v14 = vld [vmem:[%s6919_s1 + $0x550] sm:$0x3] }
  0x8f   :  { %4439 = vmatmul.mubr.f32.vlgmr.msra.gmra.mrb[0].mxu0 %v757_v57  ;;  %5584 = vmatprep.subr.bf16.mxu1 %v5583_v17  ;;  %v25_v57 = vld [vmem:[%s6918_s0 + $0x50] sm:$0xff]  ;;  %v5597_v23 = vpack.c.bf16 %v217_v14, %v89_v13  ;;  %v290_v13 = vld [vmem:[%s6919_s1 + $0x798] sm:$0x3] }
  0x90   :  { %5710 = vmatpush1.bf16.xpose.msra.mxu0 %v5709_v15  ;;  %4508 = vmatprep.mubr.f32.mxu0 %v766_v18  ;;  %v519_v63 = vrot.slane %v25_v57, %v6012_v25  ;;  %v512_v9 = vcombine.high %v25_v57, %v25_v57  ;;  %v153_v15 = vld [vmem:[%s6919_s1 + $0x350] sm:$0xff]  ;;  %v92_v18 = vld [vmem:[%s6919_s1 + $0x168] sm:$0xff]  ;;  %v815_v57 = vrot.slane %v801_v49, %v6012_v25  ;;  %v166_v49 = vld [vmem:[%s6919_s1 + $0x3b8] sm:$0xff] }
  0x91   :  { %5712 = vmatprep.subr.bf16.mxu0 %v5711_v19  ;;  %v281_v16 = vld [vmem:[%s6919_s1 + $0x750] sm:$0x3]  ;;  %v220_v19 = vld [vmem:[%s6919_s1 + $0x568] sm:$0x3] }
  0x92   :  { %v527_v7 = vcombine.high %v519_v63, %v519_v63  ;;  %v526_v17 = vrot.slane %v512_v9, %v6012_v25  ;;  %v5725_v24 = vpack.c.bf16 %v281_v16, %v153_v15  ;;  %v98_v9 = vld [vmem:[%s6919_s1 + $0x198] sm:$0xff] }
  0x94   :  { %v528_v26 = vcombine.high %v526_v17, %v526_v17 }
  0x95   :  { %2269 = vmatmul.mubr.f32.vlgmr.msra.gmra.mrb[0].mxu1 %v492_v8  ;;  %v5595_v8 = vpack.c.bf16 %v218_v1, %v90_v0  ;;  %v817_v0 = vcombine.high %v815_v57, %v815_v57  ;;  %v5735_v1 = vpack.c.bf16 %v288_v59, %v160_v58  ;;  %v101_v59 = vld [vmem:[%s6919_s1 + $0x1b0] sm:$0xff] }
  0x96   :  { %5586 = vmatpush1.bf16.xpose.msra.mxu1 %v5585_v33  ;;  %2338 = vmatprep.mubr.f32.mxu1 %v510_v35  ;;  %v219_v33 = vld [vmem:[%s6919_s1 + $0x560] sm:$0x3] }
  0x97   :  { %4509 = vmatmul.mubr.f32.vlgmr.msra.gmra.mrb[0].mxu0 %v764_v11  ;;  %5588 = vmatprep.subr.bf16.mxu1 %v5587_v36  ;;  %v5723_v11 = vpack.c.bf16 %v282_v4, %v154_v3  ;;  %v283_v35 = vld [vmem:[%s6919_s1 + $0x760] sm:$0x3]  ;;  %v5601_v42 = vpack.c.bf16 %v219_v33, %v91_v32  ;;  %v292_v32 = vld [vmem:[%s6919_s1 + $0x7a8] sm:$0x3] }
  0x98   :  { %5714 = vmatpush1.bf16.xpose.msra.mxu0 %v5713_v34  ;;  %4578 = vmatprep.mubr.f32.mxu0 %v782_v38  ;;  %v155_v34 = vld [vmem:[%s6919_s1 + $0x360] sm:$0xff]  ;;  %v222_v38 = vld [vmem:[%s6919_s1 + $0x578] sm:$0x3] }
  0x99   :  { %5716 = vmatprep.subr.bf16.mxu0 %v5715_v39  ;;  %v808_v39 = vrot.slane %v42_v31, %v6012_v25  ;;  %v5729_v43 = vpack.c.bf16 %v283_v35, %v155_v34  ;;  %v43_v3 = vld [vmem:[%s6918_s0 + $0xe0] sm:$0xff]  ;;  %v164_v31 = vld [vmem:[%s6919_s1 + $0x3a8] sm:$0xff] }
  0x9a   :  { %v95_v4 = vld [vmem:[%s6919_s1 + $0x180] sm:$0xff]  ;;  %v818_v21 = vcombine.high %v43_v3, %v43_v3 }
  0x9b   :  { %v816_v47 = vcombine.high %v808_v39, %v808_v39 }
  0x9d   :  { %2339 = vmatmul.mubr.f32.vlgmr.msra.gmra.mrb[0].mxu1 %v502_v27  ;;  %v5599_v27 = vpack.c.bf16 %v220_v19, %v92_v18 }
  0x9e   :  { %5590 = vmatpush1.bf16.xpose.msra.mxu1 %v5589_v51  ;;  %2408 = vmatprep.mubr.f32.mxu1 %v511_v53  ;;  %v221_v51 = vld [vmem:[%s6919_s1 + $0x570] sm:$0x3] }
  0x9f   :  { %4579 = vmatmul.mubr.f32.vlgmr.msra.gmra.mrb[0].mxu0 %v774_v30  ;;  %5592 = vmatprep.subr.bf16.mxu1 %v5591_v54  ;;  %v26_v30 = vld [vmem:[%s6918_s0 + $0x58] sm:$0xff]  ;;  %v285_v53 = vld [vmem:[%s6919_s1 + $0x770] sm:$0x3]  ;;  %v5605_v60 = vpack.c.bf16 %v221_v51, %v93_v50 }
  0xa0   :  { %5718 = vmatpush1.bf16.xpose.msra.mxu0 %v5717_v52  ;;  %4648 = vmatprep.mubr.f32.mxu0 %v783_v55  ;;  %v536_v36 = vrot.slane %v26_v30, %v6012_v25  ;;  %v529_v46 = vcombine.high %v26_v30, %v26_v30  ;;  %v157_v52 = vld [vmem:[%s6919_s1 + $0x370] sm:$0xff]  ;;  %v96_v55 = vld [vmem:[%s6919_s1 + $0x188] sm:$0xff]  ;;  %v832_v30 = vrot.slane %v818_v21, %v6012_v25  ;;  %v294_v50 = vld [vmem:[%s6919_s1 + $0x7b8] sm:$0x3] }
  0xa1   :  { %5720 = vmatprep.subr.bf16.mxu0 %v5719_v56  ;;  %v224_v56 = vld [vmem:[%s6919_s1 + $0x588] sm:$0x3]  ;;  %v5733_v61 = vpack.c.bf16 %v285_v53, %v157_v52  ;;  %v170_v21 = vld [vmem:[%s6919_s1 + $0x3d8] sm:$0xff] }
  0xa2   :  { %v544_v44 = vcombine.high %v536_v36, %v536_v36  ;;  %v543_v54 = vrot.slane %v529_v46, %v6012_v25  ;;  %v102_v46 = vld [vmem:[%s6919_s1 + $0x1b8] sm:$0xff] }
  0xa4   :  { %v545_v62 = vcombine.high %v543_v54, %v543_v54 }
  0xa5   :  { %2409 = vmatmul.mubr.f32.vlgmr.msra.gmra.mrb[0].mxu1 %v509_v45  ;;  %v5603_v45 = vpack.c.bf16 %v222_v38, %v94_v37  ;;  %v834_v37 = vcombine.high %v832_v30, %v832_v30  ;;  %v5743_v38 = vpack.c.bf16 %v292_v32, %v164_v31  ;;  %v105_v32 = vld [vmem:[%s6919_s1 + $0x1d0] sm:$0xff] }
  0xa6   :  { %5594 = vmatpush1.bf16.xpose.msra.mxu1 %v5593_v5  ;;  %2478 = vmatprep.mubr.f32.mxu1 %v527_v7  ;;  %v223_v5 = vld [vmem:[%s6919_s1 + $0x580] sm:$0x3] }
  0xa7   :  { %4649 = vmatmul.mubr.f32.vlgmr.msra.gmra.mrb[0].mxu0 %v781_v48  ;;  %5596 = vmatprep.subr.bf16.mxu1 %v5595_v8  ;;  %v5731_v48 = vpack.c.bf16 %v286_v41, %v158_v40  ;;  %v287_v7 = vld [vmem:[%s6919_s1 + $0x780] sm:$0x3]  ;;  %v5609_v14 = vpack.c.bf16 %v223_v5, %v95_v4  ;;  %v44_v40 = vld [vmem:[%s6918_s0 + $0xe8] sm:$0xff] }
  0xa8   :  { %5722 = vmatpush1.bf16.xpose.msra.mxu0 %v5721_v6  ;;  %4718 = vmatprep.mubr.f32.mxu0 %v799_v10  ;;  %v159_v6 = vld [vmem:[%s6919_s1 + $0x380] sm:$0xff]  ;;  %v226_v10 = vld [vmem:[%s6919_s1 + $0x598] sm:$0x3]  ;;  %v835_v58 = vcombine.high %v44_v40, %v44_v40  ;;  %v296_v4 = vld [vmem:[%s6919_s1 + $0x7c8] sm:$0x3] }
  0xa9   :  { %5724 = vmatprep.subr.bf16.mxu0 %v5723_v11  ;;  %v825_v11 = vrot.slane %v43_v3, %v6012_v25  ;;  %v5737_v15 = vpack.c.bf16 %v287_v7, %v159_v6  ;;  %v99_v41 = vld [vmem:[%s6919_s1 + $0x1a0] sm:$0xff]  ;;  %v168_v3 = vld [vmem:[%s6919_s1 + $0x3c8] sm:$0xff] }
  0xab   :  { %v833_v19 = vcombine.high %v825_v11, %v825_v11 }
  0xad   :  { %2479 = vmatmul.mubr.f32.vlgmr.msra.gmra.mrb[0].mxu1 %v519_v63  ;;  %v5607_v63 = vpack.c.bf16 %v224_v56, %v96_v55 }
  0xae   :  { %5598 = vmatpush1.bf16.xpose.msra.mxu1 %v5597_v23  ;;  %2548 = vmatprep.mubr.f32.mxu1 %v528_v26  ;;  %v225_v23 = vld [vmem:[%s6919_s1 + $0x590] sm:$0x3] }
  0xaf   :  { %4719 = vmatmul.mubr.f32.vlgmr.msra.gmra.mrb[0].mxu0 %v791_v2  ;;  %5600 = vmatprep.subr.bf16.mxu1 %v5599_v27  ;;  %v27_v2 = vld [vmem:[%s6918_s0 + $0x60] sm:$0xff]  ;;  %v289_v26 = vld [vmem:[%s6919_s1 + $0x790] sm:$0x3]  ;;  %v5613_v33 = vpack.c.bf16 %v225_v23, %v97_v22  ;;  %v298_v22 = vld [vmem:[%s6919_s1 + $0x7d8] sm:$0x3] }
  0xb0   :  { %5726 = vmatpush1.bf16.xpose.msra.mxu0 %v5725_v24  ;;  %4788 = vmatprep.mubr.f32.mxu0 %v800_v28  ;;  %v553_v8 = vrot.slane %v27_v2, %v6012_v25  ;;  %v546_v18 = vcombine.high %v27_v2, %v27_v2  ;;  %v161_v24 = vld [vmem:[%s6919_s1 + $0x390] sm:$0xff]  ;;  %v100_v28 = vld [vmem:[%s6919_s1 + $0x1a8] sm:$0xff]  ;;  %v849_v2 = vrot.slane %v835_v58, %v6012_v25  ;;  %v174_v58 = vld [vmem:[%s6919_s1 + $0x3f8] sm:$0xff] }
  0xb1   :  { %5728 = vmatprep.subr.bf16.mxu0 %v5727_v29  ;;  %v228_v29 = vld [vmem:[%s6919_s1 + $0x5a8] sm:$0x3]  ;;  %v5741_v34 = vpack.c.bf16 %v289_v26, %v161_v24 }
  0xb2   :  { %v561_v16 = vcombine.high %v553_v8, %v553_v8  ;;  %v560_v27 = vrot.slane %v546_v18, %v6012_v25  ;;  %v106_v18 = vld [vmem:[%s6919_s1 + $0x1d8] sm:$0xff] }
  0xb4   :  { %v562_v35 = vcombine.high %v560_v27, %v560_v27 }
  0xb5   :  { %2549 = vmatmul.mubr.f32.vlgmr.msra.gmra.mrb[0].mxu1 %v526_v17  ;;  %v5611_v17 = vpack.c.bf16 %v226_v10, %v98_v9  ;;  %v851_v9 = vcombine.high %v849_v2, %v849_v2  ;;  %v5751_v10 = vpack.c.bf16 %v296_v4, %v168_v3  ;;  %v109_v4 = vld [vmem:[%s6919_s1 + $0x1f0] sm:$0xff] }
  0xb6   :  { %5602 = vmatpush1.bf16.xpose.msra.mxu1 %v5601_v42  ;;  %2618 = vmatprep.mubr.f32.mxu1 %v544_v44  ;;  %v227_v42 = vld [vmem:[%s6919_s1 + $0x5a0] sm:$0x3] }
  0xb7   :  { %4789 = vmatmul.mubr.f32.vlgmr.msra.gmra.mrb[0].mxu0 %v798_v20  ;;  %5604 = vmatprep.subr.bf16.mxu1 %v5603_v45  ;;  %v5739_v20 = vpack.c.bf16 %v290_v13, %v162_v12  ;;  %v291_v44 = vld [vmem:[%s6919_s1 + $0x7a0] sm:$0x3]  ;;  %v5617_v51 = vpack.c.bf16 %v227_v42, %v99_v41  ;;  %v45_v12 = vld [vmem:[%s6918_s0 + $0xf0] sm:$0xff]  ;;  %v300_v41 = vld [vmem:[%s6919_s1 + $0x7e8] sm:$0x3] }
  0xb8   :  { %5730 = vmatpush1.bf16.xpose.msra.mxu0 %v5729_v43  ;;  %4858 = vmatprep.mubr.f32.mxu0 %v816_v47  ;;  %v163_v43 = vld [vmem:[%s6919_s1 + $0x3a0] sm:$0xff]  ;;  %v230_v47 = vld [vmem:[%s6919_s1 + $0x5b8] sm:$0x3]  ;;  %v852_v31 = vcombine.high %v45_v12, %v45_v12 }
  0xb9   :  { %5732 = vmatprep.subr.bf16.mxu0 %v5731_v48  ;;  %v842_v48 = vrot.slane %v44_v40, %v6012_v25  ;;  %v5745_v52 = vpack.c.bf16 %v291_v44, %v163_v43  ;;  %v103_v13 = vld [vmem:[%s6919_s1 + $0x1c0] sm:$0xff]  ;;  %v172_v40 = vld [vmem:[%s6919_s1 + $0x3e8] sm:$0xff] }
  0xbb   :  { %v850_v56 = vcombine.high %v842_v48, %v842_v48 }
  0xbd   :  { %2619 = vmatmul.mubr.f32.vlgmr.msra.gmra.mrb[0].mxu1 %v536_v36  ;;  %v5615_v36 = vpack.c.bf16 %v228_v29, %v100_v28 }
  0xbe   :  { %5606 = vmatpush1.bf16.xpose.msra.mxu1 %v5605_v60  ;;  %2688 = vmatprep.mubr.f32.mxu1 %v545_v62  ;;  %v229_v60 = vld [vmem:[%s6919_s1 + $0x5b0] sm:$0x3] }
  0xbf   :  { %4859 = vmatmul.mubr.f32.vlgmr.msra.gmra.mrb[0].mxu0 %v808_v39  ;;  %5608 = vmatprep.subr.bf16.mxu1 %v5607_v63  ;;  %v28_v39 = vld [vmem:[%s6918_s0 + $0x68] sm:$0xff]  ;;  %v293_v62 = vld [vmem:[%s6919_s1 + $0x7b0] sm:$0x3]  ;;  %v5621_v5 = vpack.c.bf16 %v229_v60, %v101_v59  ;;  %v302_v59 = vld [vmem:[%s6919_s1 + $0x7f8] sm:$0x3] }
  0xc0   :  { %5734 = vmatpush1.bf16.xpose.msra.mxu0 %v5733_v61  ;;  %4928 = vmatprep.mubr.f32.mxu0 %v817_v0  ;;  %v570_v45 = vrot.slane %v28_v39, %v6012_v25  ;;  %v563_v55 = vcombine.high %v28_v39, %v28_v39  ;;  %v165_v61 = vld [vmem:[%s6919_s1 + $0x3b0] sm:$0xff]  ;;  %v104_v0 = vld [vmem:[%s6919_s1 + $0x1c8] sm:$0xff]  ;;  %v866_v39 = vrot.slane %v852_v31, %v6012_v25 }
  0xc1   :  { %5736 = vmatprep.subr.bf16.mxu0 %v5735_v1  ;;  %v232_v1 = vld [vmem:[%s6919_s1 + $0x5c8] sm:$0x3]  ;;  %v5749_v6 = vpack.c.bf16 %v293_v62, %v165_v61  ;;  %v5763_v3 = vpack.c.bf16 %v302_v59, %v174_v58 }
  0xc2   :  { %v578_v53 = vcombine.high %v570_v45, %v570_v45  ;;  %v577_v63 = vrot.slane %v563_v55, %v6012_v25  ;;  %v110_v55 = vld [vmem:[%s6919_s1 + $0x1f8] sm:$0xff] }
  0xc4   :  { %v579_v7 = vcombine.high %v577_v63, %v577_v63 }
  0xc5   :  { %2689 = vmatmul.mubr.f32.vlgmr.msra.gmra.mrb[0].mxu1 %v543_v54  ;;  %v5619_v54 = vpack.c.bf16 %v230_v47, %v102_v46  ;;  %v868_v46 = vcombine.high %v866_v39, %v866_v39  ;;  %v5759_v47 = vpack.c.bf16 %v300_v41, %v172_v40 }
  0xc6   :  { %5610 = vmatpush1.bf16.xpose.msra.mxu1 %v5609_v14  ;;  %2758 = vmatprep.mubr.f32.mxu1 %v561_v16  ;;  %v231_v14 = vld [vmem:[%s6919_s1 + $0x5c0] sm:$0x3] }
  0xc7   :  { %4929 = vmatmul.mubr.f32.vlgmr.msra.gmra.mrb[0].mxu0 %v815_v57  ;;  %5612 = vmatprep.subr.bf16.mxu1 %v5611_v17  ;;  %v5747_v57 = vpack.c.bf16 %v294_v50, %v166_v49  ;;  %v295_v16 = vld [vmem:[%s6919_s1 + $0x7c0] sm:$0x3]  ;;  %v5625_v23 = vpack.c.bf16 %v231_v14, %v103_v13  ;;  %v46_v49 = vld [vmem:[%s6918_s0 + $0xf8] sm:$0xff] }
  0xc8   :  { %5738 = vmatpush1.bf16.xpose.msra.mxu0 %v5737_v15  ;;  %4998 = vmatprep.mubr.f32.mxu0 %v833_v19  ;;  %v167_v15 = vld [vmem:[%s6919_s1 + $0x3c0] sm:$0xff]  ;;  %v234_v19 = vld [vmem:[%s6919_s1 + $0x5d8] sm:$0x3] }
  0xc9   :  { %5740 = vmatprep.subr.bf16.mxu0 %v5739_v20  ;;  %v859_v20 = vrot.slane %v45_v12, %v6012_v25  ;;  %v5753_v24 = vpack.c.bf16 %v295_v16, %v167_v15  ;;  %v107_v50 = vld [vmem:[%s6919_s1 + $0x1e0] sm:$0xff] }
  0xca   :  { %v5510_v14 = vld [vmem:[%s6920_s2] ss:$0 sm:$0xff] }
  0xcb   :  { %v867_v29 = vcombine.high %v859_v20, %v859_v20 }
  0xcd   :  { %2759 = vmatmul.mubr.f32.vlgmr.msra.gmra.mrb[0].mxu1 %v553_v8  ;;  %v5623_v8 = vpack.c.bf16 %v232_v1, %v104_v0  ;;  %v869_v1 = vcombine.high %v46_v49, %v46_v49 }
  0xce   :  { %5614 = vmatpush1.bf16.xpose.msra.mxu1 %v5613_v33  ;;  %2828 = vmatprep.mubr.f32.mxu1 %v562_v35  ;;  %v233_v33 = vld [vmem:[%s6919_s1 + $0x5d0] sm:$0x3] }
  0xcf   :  { %4999 = vmatmul.mubr.f32.vlgmr.msra.gmra.mrb[0].mxu0 %v825_v11  ;;  %5616 = vmatprep.subr.bf16.mxu1 %v5615_v36  ;;  %v29_v11 = vld [vmem:[%s6918_s0 + $0x70] sm:$0xff]  ;;  %v5629_v42 = vpack.c.bf16 %v233_v33, %v105_v32 }
  0xd0   :  { %5742 = vmatpush1.bf16.xpose.msra.mxu0 %v5741_v34  ;;  %5068 = vmatprep.mubr.f32.mxu0 %v834_v37  ;;  %v587_v17 = vrot.slane %v29_v11, %v6012_v25  ;;  %v580_v28 = vcombine.high %v29_v11, %v29_v11  ;;  %v169_v34 = vld [vmem:[%s6919_s1 + $0x3d0] sm:$0xff]  ;;  %v108_v37 = vld [vmem:[%s6919_s1 + $0x1e8] sm:$0xff] }
  0xd1   :  { %5744 = vmatprep.subr.bf16.mxu0 %v5743_v38  ;;  %v297_v35 = vld [vmem:[%s6919_s1 + $0x7d0] sm:$0x3]  ;;  %v236_v38 = vld [vmem:[%s6919_s1 + $0x5e8] sm:$0x3] }
  0xd2   :  { %v595_v26 = vcombine.high %v587_v17, %v587_v17  ;;  %v594_v36 = vrot.slane %v580_v28, %v6012_v25  ;;  %v5757_v43 = vpack.c.bf16 %v297_v35, %v169_v34 }
  0xd4   :  { %v596_v44 = vcombine.high %v594_v36, %v594_v36 }
  0xd5   :  { %2829 = vmatmul.mubr.f32.vlgmr.msra.gmra.mrb[0].mxu1 %v560_v27  ;;  %v5627_v27 = vpack.c.bf16 %v234_v19, %v106_v18 }
  0xd6   :  { %5618 = vmatpush1.bf16.xpose.msra.mxu1 %v5617_v51  ;;  %2898 = vmatprep.mubr.f32.mxu1 %v578_v53  ;;  %v235_v51 = vld [vmem:[%s6919_s1 + $0x5e0] sm:$0x3] }
  0xd7   :  { %5069 = vmatmul.mubr.f32.vlgmr.msra.gmra.mrb[0].mxu0 %v832_v30  ;;  %5620 = vmatprep.subr.bf16.mxu1 %v5619_v54  ;;  %v5755_v30 = vpack.c.bf16 %v298_v22, %v170_v21  ;;  %v299_v53 = vld [vmem:[%s6919_s1 + $0x7e0] sm:$0x3]  ;;  %v5633_v60 = vpack.c.bf16 %v235_v51, %v107_v50 }
  0xd8   :  { %5746 = vmatpush1.bf16.xpose.msra.mxu0 %v5745_v52  ;;  %5138 = vmatprep.mubr.f32.mxu0 %v850_v56  ;;  %v171_v52 = vld [vmem:[%s6919_s1 + $0x3e0] sm:$0xff]  ;;  %v238_v56 = vld [vmem:[%s6919_s1 + $0x5f8] sm:$0x3] }
  0xd9   :  { %5748 = vmatprep.subr.bf16.mxu0 %v5747_v57  ;;  %v876_v57 = vrot.slane %v46_v49, %v6012_v25  ;;  %v5761_v61 = vpack.c.bf16 %v299_v53, %v171_v52 }
  0xdd   :  { %2899 = vmatmul.mubr.f32.vlgmr.msra.gmra.mrb[0].mxu1 %v570_v45  ;;  %v5631_v45 = vpack.c.bf16 %v236_v38, %v108_v37 }
  0xde   :  { %5622 = vmatpush1.bf16.xpose.msra.mxu1 %v5621_v5  ;;  %2968 = vmatprep.mubr.f32.mxu1 %v579_v7  ;;  %v237_v5 = vld [vmem:[%s6919_s1 + $0x5f0] sm:$0x3] }
  0xdf   :  { %5139 = vmatmul.mubr.f32.vlgmr.msra.gmra.mrb[0].mxu0 %v842_v48  ;;  %5624 = vmatprep.subr.bf16.mxu1 %v5623_v8  ;;  %v30_v48 = vld [vmem:[%s6918_s0 + $0x78] sm:$0xff]  ;;  %v301_v7 = vld [vmem:[%s6919_s1 + $0x7f0] sm:$0x3] }
  0xe0   :  { %5750 = vmatpush1.bf16.xpose.msra.mxu0 %v5749_v6  ;;  %5208 = vmatprep.mubr.f32.mxu0 %v851_v9  ;;  %v604_v54 = vrot.slane %v30_v48, %v6012_v25  ;;  %v597_v0 = vcombine.high %v30_v48, %v30_v48  ;;  %v173_v6 = vld [vmem:[%s6919_s1 + $0x3f0] sm:$0xff]  ;;  %v883_v9 = vrot.slane %v869_v1, %v6012_v25 }
  0xe1   :  { %5752 = vmatprep.subr.bf16.mxu0 %v5751_v10  ;;  %v5637_v10 = vpack.c.bf16 %v237_v5, %v109_v4  ;;  %v5765_v11 = vpack.c.bf16 %v301_v7, %v173_v6 }
  0xe2   :  { %v612_v62 = vcombine.high %v604_v54, %v604_v54  ;;  %v611_v8 = vrot.slane %v597_v0, %v6012_v25  ;;  %v885_v13 = vcombine.high %v883_v9, %v883_v9 }
  0xe4   :  { %v613_v12 = vcombine.high %v611_v8, %v611_v8 }
  0xe5   :  { %2969 = vmatmul.mubr.f32.vlgmr.msra.gmra.mrb[0].mxu1 %v577_v63  ;;  %v5635_v63 = vpack.c.bf16 %v238_v56, %v110_v55 }
  0xe6   :  { %5626 = vmatpush1.bf16.xpose.msra.mxu1 %v5625_v23  ;;  %3038 = vmatprep.mubr.f32.mxu1 %v595_v26 }
  0xe7   :  { %5209 = vmatmul.mubr.f32.vlgmr.msra.gmra.mrb[0].mxu0 %v849_v2  ;;  %5628 = vmatprep.subr.bf16.mxu1 %v5627_v27  ;;  %v884_v2 = vcombine.high %v876_v57, %v876_v57 }
  0xe8   :  { %5754 = vmatpush1.bf16.xpose.msra.mxu0 %v5753_v24  ;;  %5278 = vmatprep.mubr.f32.mxu0 %v867_v29 }
  0xe9   :  { %5756 = vmatprep.subr.bf16.mxu0 %v5755_v30 }
  0xed   :  { %3039 = vmatmul.mubr.f32.vlgmr.msra.gmra.mrb[0].mxu1 %v587_v17 }
  0xee   :  { %5630 = vmatpush1.bf16.xpose.msra.mxu1 %v5629_v42  ;;  %3108 = vmatprep.mubr.f32.mxu1 %v596_v44 }
  0xef   :  { %5279 = vmatmul.mubr.f32.vlgmr.msra.gmra.mrb[0].mxu0 %v859_v20  ;;  %5632 = vmatprep.subr.bf16.mxu1 %v5631_v45 }
  0xf0   :  { %5758 = vmatpush1.bf16.xpose.msra.mxu0 %v5757_v43  ;;  %5348 = vmatprep.mubr.f32.mxu0 %v868_v46 }
  0xf1   :  { %5760 = vmatprep.subr.bf16.mxu0 %v5759_v47 }
  0xf5   :  { %3109 = vmatmul.mubr.f32.vlgmr.msra.gmra.mrb[0].mxu1 %v594_v36 }
  0xf6   :  { %5634 = vmatpush1.bf16.xpose.msra.mxu1 %v5633_v60  ;;  %3178 = vmatprep.mubr.f32.mxu1 %v612_v62 }
  0xf7   :  { %5349 = vmatmul.mubr.f32.vlgmr.msra.gmra.mrb[0].mxu0 %v866_v39  ;;  %5636 = vmatprep.subr.bf16.mxu1 %v5635_v63 }
  0xf8   :  { %5762 = vmatpush1.bf16.xpose.msra.mxu0 %v5761_v61  ;;  %5418 = vmatprep.mubr.f32.mxu0 %v884_v2 }
  0xf9   :  { %5764 = vmatprep.subr.bf16.mxu0 %v5763_v3 }
  0xfd   :  { %3179 = vmatmul.mubr.f32.vlgmr.msra.gmra.mrb[0].mxu1 %v604_v54 }
  0xfe   :  { %5638 = vmatpush1.bf16.xpose.msra.mxu1 %v5637_v10  ;;  %3248 = vmatprep.mubr.f32.mxu1 %v613_v12 }
  0xff   :  { %5419 = vmatmul.mubr.f32.vlgmr.msra.gmra.mrb[0].mxu0 %v876_v57 }
 0x100   :  { %5766 = vmatpush1.bf16.xpose.msra.mxu0 %v5765_v11  ;;  %5488 = vmatprep.mubr.f32.mxu0 %v885_v13 }
 0x105   :  { %3249 = vmatmul.mubr.f32.vlgmr.msra.gmra.mrb[0].mxu1 %v611_v8 }
 0x107   :  { %5489 = vmatmul.mubr.f32.vlgmr.msra.gmra.mrb[0].mxu0 %v883_v9 }
 0x1d8   :  { %v3250_v15 = vpop.f32.mrb[0].mxu1 }
 0x1d9   :  { %v5767_v16 = vadd.f32 %v5510_v14, %v3250_v15  ;;  %v3252_v17 = vpop.f32.mrb[1].mxu1 }
 0x1da   :  { %v5490_v25 = vpop.f32.mrb[0].mxu0 }
 0x1db   :  { %v5492_v18 = vpop.f32.mrb[1].mxu0  ;;  %v5768_v19 = vadd.f32 %v5767_v16, %v5490_v25 }
 0x1dd   :  { %5495 = vst.msk [vmem:[#allocation2] sm:$0x3] %vm5494_vm0, %v5768_v19 }
 0x1de   :  { %5938 = shalt.err (!%p5935_p4)
}
 0x1df   :  { %s5939_s25 = scalar_lea.hbm %s6921_s3, 32 }
 0x1e0   :  { %p5940_p5 = scmp.ne.s32.totalorder %s6921_s3, %s5939_s25  ;;  %p5943_p6 = scmp.lt.u32.totalorder %s5939_s25, %s6921_s3 }
 0x1e2   :  { %p5945_p7 = pnand %p5943_p6, %p5940_p5 }
 0x1e4   :  { %5948 = shalt.err (!%p5945_p7)
}
 0x1e5   :  { %5505 = dma.vmem_to_hbm [thread:$0]  %s5503_s22, 32, %s6921_s3, [#allocation3]  }
 0x1e6   :  { %5949 = dma.done.wait [#allocation3], 32  }
 0x1e7   :  { %5950 = vsyncadd [#allocation3], 4294967264 }
 0x1e8   :  { %5509 = vsyncpa [#allocation3], 1 }

</bundles_post_ra>
